<compile_context>
chip_gen: v7x
topology: tpu7x:2x2x1
jax: 0.10.0
libtpu: 0.0.40
codegen_flags: <defaults>
</compile_context>

<pallas_src>
import functools

import jax
import jax.numpy as jnp
from jax.experimental import pallas as pl
from jax.experimental.pallas import tpu as pltpu

LANE = 128  # all feature / lane dims padded to this


# ---------------------------------------------------------------------------
# Fused forward kernel (one grid step = one graph-batch, everything in VMEM)
# ---------------------------------------------------------------------------

def _fused_forward_kernel(a_ref, x_ref, ms_ref, cw_ref, cb_ref,
                          w1_ref, b1_ref, w2_ref, b2_ref, w3_ref, b3_ref,
                          o_ref, *, num_layers, scale, sb):
    f32 = jnp.float32
    h = x_ref[...]                                   # (NP, LANE) node features

    # GCN stack: relu(A_hat @ (h @ W_l) + b_l).  a_ref re-loaded each use.
    for layer in range(num_layers):
        hw = jnp.dot(h, cw_ref[layer], preferred_element_type=f32)
        h = jnp.maximum(
            jnp.dot(a_ref[...], hw, preferred_element_type=f32)
            + cb_ref[layer], 0.0)

    # Multi-scale readout (mean pooling fused into ms_ref): (scale*sb, LANE)
    pooled = jnp.dot(ms_ref[...], h, preferred_element_type=f32)

    # fc1 with the scale/graph permutation folded into per-scale partial
    # matmuls: h1[b] = sum_s pooled[s*sb + b] @ fc1_w[s]   (keep as-is; three
    # (8,128)@(128,128) pushes beat an XLU transpose at this size).
    acc = jnp.dot(pooled[0:sb, :], w1_ref[0], preferred_element_type=f32)
    for s in range(1, scale):
        acc = acc + jnp.dot(pooled[s * sb:(s + 1) * sb, :], w1_ref[s],
                            preferred_element_type=f32)
    h1 = jnp.maximum(acc + b1_ref[...], 0.0)

    # dropout is identity in eval mode.
    h2 = jnp.maximum(
        jnp.dot(h1, w2_ref[...], preferred_element_type=f32) + b2_ref[...],
        0.0)
    logits = jnp.dot(h2, w3_ref[...], preferred_element_type=f32) + b3_ref[...]

    # Padded class lanes carry a -1e30 bias -> exp underflows to 0, so the
    # max / sum reductions only see the real classes.
    m = jnp.max(logits, axis=-1, keepdims=True)
    z = logits - m
    lse = jnp.log(jnp.sum(jnp.exp(z), axis=-1, keepdims=True))
    o_ref[...] = z - lse


def model_forward(a_all, x_all, ms_all, cw_pad, cb_pad,
                  w1_pad, b1_pad, w2_pad, b2_pad, w3_pad, b3_pad,
                  *, num_layers, scale, sb):
    G, NP, _ = a_all.shape
    kernel = functools.partial(_fused_forward_kernel, num_layers=num_layers,
                               scale=scale, sb=sb)
    in_specs = [
        # per-graph-batch operands: vary with the grid step (pipelined DMA)
        pl.BlockSpec((None, NP, NP), lambda g: (g, 0, 0)),            # a_hat
        pl.BlockSpec((None, NP, LANE), lambda g: (g, 0, 0)),          # x
        pl.BlockSpec((None, scale * sb, NP), lambda g: (g, 0, 0)),    # ms op
        # weights/biases: constant index_map -> DMA'd once, stay resident
        pl.BlockSpec((num_layers, LANE, LANE), lambda g: (0, 0, 0)),  # conv W
        pl.BlockSpec((num_layers, 1, LANE), lambda g: (0, 0, 0)),     # conv b
        pl.BlockSpec((scale, LANE, LANE), lambda g: (0, 0, 0)),       # fc1 W
        pl.BlockSpec((1, LANE), lambda g: (0, 0)),                    # fc1 b
        pl.BlockSpec((LANE, LANE), lambda g: (0, 0)),                 # fc2 W
        pl.BlockSpec((1, LANE), lambda g: (0, 0)),                    # fc2 b
        pl.BlockSpec((LANE, LANE), lambda g: (0, 0)),                 # fc3 W
        pl.BlockSpec((1, LANE), lambda g: (0, 0)),                    # fc3 b
    ]
    out_spec = pl.BlockSpec((None, sb, LANE), lambda g: (g, 0, 0))
    return pl.pallas_call(
        kernel,
        out_shape=jax.ShapeDtypeStruct((G, sb, LANE), jnp.float32),
        grid=(G,),
        in_specs=in_specs,
        out_specs=out_spec,
        compiler_params=pltpu.CompilerParams(
            dimension_semantics=("parallel",)),   # shards across v7x's 2 TCs
    )(a_all, x_all, ms_all, cw_pad, cb_pad,
      w1_pad, b1_pad, w2_pad, b2_pad, w3_pad, b3_pad)


# ---------------------------------------------------------------------------
# Pure-JAX reference (original, unpadded semantics)
# ---------------------------------------------------------------------------

def reference_forward(x, a_hat, ms_op, params, *, scale, batch_size,
                      hidden_dim):
    h = x
    for w, b in zip(params["conv_w"], params["conv_b"]):
        h = jnp.maximum(a_hat @ (h @ w) + b, 0.0)
    pooled = (ms_op @ h).reshape(scale, batch_size, hidden_dim)
    pooled = jnp.transpose(pooled, (1, 0, 2)).reshape(batch_size,
                                                      scale * hidden_dim)
    h1 = jnp.maximum(pooled @ params["fc1_w"] + params["fc1_b"], 0.0)
    h2 = jnp.maximum(h1 @ params["fc2_w"] + params["fc2_b"], 0.0)
    logits = h2 @ params["fc3_w"] + params["fc3_b"]
    return jax.nn.log_softmax(logits, axis=-1)


# ---------------------------------------------------------------------------
# Main
# ---------------------------------------------------------------------------

if __name__ == "__main__":
    # args: num_features=16, hidden_dim=32, num_layers=3, r=2, Lev=2 -> scale=3,
    #       num_classes=8, dropout=0.5 (eval mode -> identity)
    N = 64            # total nodes per graph-batch
    B = 4             # batch_size (number of graphs per graph-batch)
    F_IN = 16
    HID = 32
    NUM_LAYERS = 3
    R, LEV = 2, 2
    SCALE = (R - 1) * LEV + 1
    NUM_CLASSES = 8
    G = 8             # graph-batches streamed through the grid

    NP = N                           # node dim: already a multiple of 8
    SB = ((B + 7) // 8) * 8          # padded per-scale graph rows (sublane)

    key = jax.random.PRNGKey(0)
    kparam, kdata = jax.random.split(key)

    # ---- deterministic parameters ------------------------------------------
    keys = jax.random.split(kparam, 12)

    def init_w(k, shape):
        fan_in = shape[0]
        return (jax.random.uniform(k, shape, dtype=jnp.float32, minval=-1.0,
                                   maxval=1.0) / jnp.sqrt(float(fan_in)))

    conv_w = [init_w(keys[0], (F_IN, HID))]
    conv_b = [jnp.zeros((HID,), jnp.float32)]
    for i in range(NUM_LAYERS - 1):
        conv_w.append(init_w(keys[1 + i], (HID, HID)))
        conv_b.append(jnp.zeros((HID,), jnp.float32))

    params = dict(
        conv_w=conv_w,
        conv_b=conv_b,
        fc1_w=init_w(keys[4], (SCALE * HID, HID)),
        fc1_b=init_w(keys[5], (HID,)),
        fc2_w=init_w(keys[6], (HID, HID // 2)),
        fc2_b=init_w(keys[7], (HID // 2,)),
        fc3_w=init_w(keys[8], (HID // 2, NUM_CLASSES)),
        fc3_b=init_w(keys[9], (NUM_CLASSES,)),
    )

    # ---- synthetic per-graph-batch data (data.x / edge_index / batch / d) --
    def make_batch(k):
        ks = jax.random.split(k, 4)
        x = jax.random.normal(ks[0], (N, F_IN), dtype=jnp.float32)
        adj = (jax.random.uniform(ks[1], (N, N)) < 0.08).astype(jnp.float32)
        adj = jnp.maximum(adj, adj.T) + jnp.eye(N, dtype=jnp.float32)
        dinv = 1.0 / jnp.sqrt(jnp.sum(adj, axis=1))
        a_hat = adj * dinv[:, None] * dinv[None, :]
        batch = jnp.repeat(jnp.arange(B), N // B)
        pool = (batch[None, :] == jnp.arange(B)[:, None]).astype(jnp.float32)
        pool = pool / jnp.sum(pool, axis=1, keepdims=True)
        d = jax.random.normal(ks[2], (SCALE * N, N), dtype=jnp.float32)
        d = d * (jax.random.uniform(ks[3], (SCALE * N, N)) < 0.1
                 ).astype(jnp.float32) * 0.3
        ms_op = jnp.concatenate(
            [pool @ d[s * N:(s + 1) * N] for s in range(SCALE)], axis=0)
        return x, a_hat, ms_op

    graphs = [make_batch(k) for k in jax.random.split(kdata, G)]

    # ---- one-time lane-dense padding (setup cost, outside the hot path) ----
    def pad2(arr, rows, cols, fill=0.0):
        out = jnp.full((rows, cols), fill, jnp.float32)
        return out.at[:arr.shape[0], :arr.shape[1]].set(arr)

    def pad_ms(ms_op):
        out = jnp.zeros((SCALE * SB, NP), jnp.float32)
        for s in range(SCALE):
            out = out.at[s * SB:s * SB + B, :N].set(ms_op[s * B:(s + 1) * B])
        return out

    x_all = jnp.stack([pad2(g[0], NP, LANE) for g in graphs])   # (G, 64, 128)
    a_all = jnp.stack([g[1] for g in graphs])                   # (G, 64, 64)
    ms_all = jnp.stack([pad_ms(g[2]) for g in graphs])          # (G, 24, 64)

    cw_pad = jnp.stack([pad2(w, LANE, LANE) for w in conv_w])            # (L,128,128)
    cb_pad = jnp.stack([pad2(b.reshape(1, -1), 1, LANE) for b in conv_b])
    w1_pad = jnp.stack(
        [pad2(params["fc1_w"][s * HID:(s + 1) * HID], LANE, LANE)
         for s in range(SCALE)])                                         # (S,128,128)
    b1_pad = pad2(params["fc1_b"].reshape(1, -1), 1, LANE)
    w2_pad = pad2(params["fc2_w"], LANE, LANE)
    b2_pad = pad2(params["fc2_b"].reshape(1, -1), 1, LANE)
    w3_pad = pad2(params["fc3_w"], LANE, LANE)
    # padded class lanes get -1e30 so log_softmax ignores them
    b3_pad = pad2(params["fc3_b"].reshape(1, -1), 1, LANE, fill=-1e30)

    # ---- run fused, batch-pipelined kernel ----------------------------------
    fwd = jax.jit(functools.partial(model_forward, num_layers=NUM_LAYERS,
                                    scale=SCALE, sb=SB))
    out_pad = fwd(a_all, x_all, ms_all, cw_pad, cb_pad,
                  w1_pad, b1_pad, w2_pad, b2_pad, w3_pad, b3_pad)
    out_pad = jax.block_until_ready(out_pad)

    # slice batch-row / class-lane padding once, at the consumer
    out = out_pad[:, :B, :NUM_CLASSES]
    assert out.shape == (G, B, NUM_CLASSES)

    for gi, (xg, ag, msg) in enumerate(graphs):
        ref = reference_forward(xg, ag, msg, params, scale=SCALE,
                                batch_size=B, hidden_dim=HID)
        assert jnp.allclose(out[gi], ref, atol=1e-4, rtol=1e-4), \
            f"mismatch vs reference (graph-batch {gi})"

    print("KERNEL_OK")
</pallas_src>

<mosaic_0001>
module attributes {stable_mosaic.version = 11 : i64} {
  func.func @_fused_forward_kernel(%arg0: i32, %arg1: memref<1x64x64xf32, #tpu.memory_space<vmem>>, %arg2: memref<1x64x128xf32, #tpu.memory_space<vmem>>, %arg3: memref<1x24x64xf32, #tpu.memory_space<vmem>>, %arg4: memref<3x128x128xf32, #tpu.memory_space<vmem>>, %arg5: memref<3x1x128xf32, #tpu.memory_space<vmem>>, %arg6: memref<3x128x128xf32, #tpu.memory_space<vmem>>, %arg7: memref<1x128xf32, #tpu.memory_space<vmem>>, %arg8: memref<128x128xf32, #tpu.memory_space<vmem>>, %arg9: memref<1x128xf32, #tpu.memory_space<vmem>>, %arg10: memref<128x128xf32, #tpu.memory_space<vmem>>, %arg11: memref<1x128xf32, #tpu.memory_space<vmem>>, %arg12: memref<1x8x128xf32, #tpu.memory_space<vmem>>) attributes {dimension_semantics = [#tpu.dimension_semantics<parallel>], iteration_bounds = array<i64: 8>, scalar_prefetch = 0 : i64, scratch_operands = 0 : i64, tpu.core_type = #tpu.core_type<tc>, window_params = [{transform_indices = @transform_0, window_bounds = array<i64: 1, 64, 64>}, {transform_indices = @transform_1, window_bounds = array<i64: 1, 64, 128>}, {transform_indices = @transform_2, window_bounds = array<i64: 1, 24, 64>}, {pipeline_mode = #tpu.pipeline_mode<synchronous>, transform_indices = @transform_3, window_bounds = array<i64: 3, 128, 128>}, {pipeline_mode = #tpu.pipeline_mode<synchronous>, transform_indices = @transform_4, window_bounds = array<i64: 3, 1, 128>}, {pipeline_mode = #tpu.pipeline_mode<synchronous>, transform_indices = @transform_5, window_bounds = array<i64: 3, 128, 128>}, {pipeline_mode = #tpu.pipeline_mode<synchronous>, transform_indices = @transform_6, window_bounds = array<i64: 1, 128>}, {pipeline_mode = #tpu.pipeline_mode<synchronous>, transform_indices = @transform_7, window_bounds = array<i64: 128, 128>}, {pipeline_mode = #tpu.pipeline_mode<synchronous>, transform_indices = @transform_8, window_bounds = array<i64: 1, 128>}, {pipeline_mode = #tpu.pipeline_mode<synchronous>, transform_indices = @transform_9, window_bounds = array<i64: 128, 128>}, {pipeline_mode = #tpu.pipeline_mode<synchronous>, transform_indices = @transform_10, window_bounds = array<i64: 1, 128>}, {transform_indices = @transform_11, window_bounds = array<i64: 1, 8, 128>}]} {
    %c0 = arith.constant 0 : index
    %c0_0 = arith.constant 0 : index
    %c0_1 = arith.constant 0 : index
    %0 = vector.load %arg2[%c0, %c0_0, %c0_1] : memref<1x64x128xf32, #tpu.memory_space<vmem>>, vector<1x64x128xf32>
    %1 = vector.shape_cast %0 : vector<1x64x128xf32> to vector<64x128xf32>
    %c0_2 = arith.constant 0 : index
    %c0_3 = arith.constant 0 : index
    %c0_4 = arith.constant 0 : index
    %2 = vector.load %arg4[%c0_2, %c0_3, %c0_4] : memref<3x128x128xf32, #tpu.memory_space<vmem>>, vector<1x128x128xf32>
    %3 = vector.shape_cast %2 : vector<1x128x128xf32> to vector<128x128xf32>
    %cst = arith.constant dense<0.000000e+00> : vector<64x128xf32>
    %4 = tpu.matmul %1, %3, %cst {dimension_numbers = #tpu.dot_dimension_numbers<[1], [0], [0], [1], [0, 0, 1, 1], [], []>} : vector<64x128xf32>, vector<128x128xf32>, vector<64x128xf32> -> vector<64x128xf32>
    %c0_5 = arith.constant 0 : index
    %c0_6 = arith.constant 0 : index
    %c0_7 = arith.constant 0 : index
    %5 = vector.load %arg1[%c0_5, %c0_6, %c0_7] : memref<1x64x64xf32, #tpu.memory_space<vmem>>, vector<1x64x64xf32>
    %6 = vector.shape_cast %5 : vector<1x64x64xf32> to vector<64x64xf32>
    %cst_8 = arith.constant dense<0.000000e+00> : vector<64x128xf32>
    %7 = tpu.matmul %6, %4, %cst_8 {dimension_numbers = #tpu.dot_dimension_numbers<[1], [0], [0], [1], [0, 0, 1, 1], [], []>} : vector<64x64xf32>, vector<64x128xf32>, vector<64x128xf32> -> vector<64x128xf32>
    %c0_9 = arith.constant 0 : index
    %c0_10 = arith.constant 0 : index
    %c0_11 = arith.constant 0 : index
    %8 = vector.load %arg5[%c0_9, %c0_10, %c0_11] : memref<3x1x128xf32, #tpu.memory_space<vmem>>, vector<1x1x128xf32>
    %9 = vector.shape_cast %8 : vector<1x1x128xf32> to vector<1x128xf32>
    %10 = vector.broadcast %9 : vector<1x128xf32> to vector<64x128xf32>
    %11 = arith.addf %7, %10 : vector<64x128xf32>
    %cst_12 = arith.constant 0.000000e+00 : f32
    %12 = vector.broadcast %cst_12 : f32 to vector<64x128xf32>
    %13 = arith.maximumf %11, %12 : vector<64x128xf32>
    %c1 = arith.constant 1 : index
    %c0_13 = arith.constant 0 : index
    %c0_14 = arith.constant 0 : index
    %14 = vector.load %arg4[%c1, %c0_13, %c0_14] : memref<3x128x128xf32, #tpu.memory_space<vmem>>, vector<1x128x128xf32>
    %15 = vector.shape_cast %14 : vector<1x128x128xf32> to vector<128x128xf32>
    %cst_15 = arith.constant dense<0.000000e+00> : vector<64x128xf32>
    %16 = tpu.matmul %13, %15, %cst_15 {dimension_numbers = #tpu.dot_dimension_numbers<[1], [0], [0], [1], [0, 0, 1, 1], [], []>} : vector<64x128xf32>, vector<128x128xf32>, vector<64x128xf32> -> vector<64x128xf32>
    %c0_16 = arith.constant 0 : index
    %c0_17 = arith.constant 0 : index
    %c0_18 = arith.constant 0 : index
    %17 = vector.load %arg1[%c0_16, %c0_17, %c0_18] : memref<1x64x64xf32, #tpu.memory_space<vmem>>, vector<1x64x64xf32>
    %18 = vector.shape_cast %17 : vector<1x64x64xf32> to vector<64x64xf32>
    %cst_19 = arith.constant dense<0.000000e+00> : vector<64x128xf32>
    %19 = tpu.matmul %18, %16, %cst_19 {dimension_numbers = #tpu.dot_dimension_numbers<[1], [0], [0], [1], [0, 0, 1, 1], [], []>} : vector<64x64xf32>, vector<64x128xf32>, vector<64x128xf32> -> vector<64x128xf32>
    %c1_20 = arith.constant 1 : index
    %c0_21 = arith.constant 0 : index
    %c0_22 = arith.constant 0 : index
    %20 = vector.load %arg5[%c1_20, %c0_21, %c0_22] : memref<3x1x128xf32, #tpu.memory_space<vmem>>, vector<1x1x128xf32>
    %21 = vector.shape_cast %20 : vector<1x1x128xf32> to vector<1x128xf32>
    %22 = vector.broadcast %21 : vector<1x128xf32> to vector<64x128xf32>
    %23 = arith.addf %19, %22 : vector<64x128xf32>
    %cst_23 = arith.constant 0.000000e+00 : f32
    %24 = vector.broadcast %cst_23 : f32 to vector<64x128xf32>
    %25 = arith.maximumf %23, %24 : vector<64x128xf32>
    %c2 = arith.constant 2 : index
    %c0_24 = arith.constant 0 : index
    %c0_25 = arith.constant 0 : index
    %26 = vector.load %arg4[%c2, %c0_24, %c0_25] : memref<3x128x128xf32, #tpu.memory_space<vmem>>, vector<1x128x128xf32>
    %27 = vector.shape_cast %26 : vector<1x128x128xf32> to vector<128x128xf32>
    %cst_26 = arith.constant dense<0.000000e+00> : vector<64x128xf32>
    %28 = tpu.matmul %25, %27, %cst_26 {dimension_numbers = #tpu.dot_dimension_numbers<[1], [0], [0], [1], [0, 0, 1, 1], [], []>} : vector<64x128xf32>, vector<128x128xf32>, vector<64x128xf32> -> vector<64x128xf32>
    %c0_27 = arith.constant 0 : index
    %c0_28 = arith.constant 0 : index
    %c0_29 = arith.constant 0 : index
    %29 = vector.load %arg1[%c0_27, %c0_28, %c0_29] : memref<1x64x64xf32, #tpu.memory_space<vmem>>, vector<1x64x64xf32>
    %30 = vector.shape_cast %29 : vector<1x64x64xf32> to vector<64x64xf32>
    %cst_30 = arith.constant dense<0.000000e+00> : vector<64x128xf32>
    %31 = tpu.matmul %30, %28, %cst_30 {dimension_numbers = #tpu.dot_dimension_numbers<[1], [0], [0], [1], [0, 0, 1, 1], [], []>} : vector<64x64xf32>, vector<64x128xf32>, vector<64x128xf32> -> vector<64x128xf32>
    %c2_31 = arith.constant 2 : index
    %c0_32 = arith.constant 0 : index
    %c0_33 = arith.constant 0 : index
    %32 = vector.load %arg5[%c2_31, %c0_32, %c0_33] : memref<3x1x128xf32, #tpu.memory_space<vmem>>, vector<1x1x128xf32>
    %33 = vector.shape_cast %32 : vector<1x1x128xf32> to vector<1x128xf32>
    %34 = vector.broadcast %33 : vector<1x128xf32> to vector<64x128xf32>
    %35 = arith.addf %31, %34 : vector<64x128xf32>
    %cst_34 = arith.constant 0.000000e+00 : f32
    %36 = vector.broadcast %cst_34 : f32 to vector<64x128xf32>
    %37 = arith.maximumf %35, %36 : vector<64x128xf32>
    %c0_35 = arith.constant 0 : index
    %c0_36 = arith.constant 0 : index
    %c0_37 = arith.constant 0 : index
    %38 = vector.load %arg3[%c0_35, %c0_36, %c0_37] : memref<1x24x64xf32, #tpu.memory_space<vmem>>, vector<1x24x64xf32>
    %39 = vector.shape_cast %38 : vector<1x24x64xf32> to vector<24x64xf32>
    %cst_38 = arith.constant dense<0.000000e+00> : vector<24x128xf32>
    %40 = tpu.matmul %39, %37, %cst_38 {dimension_numbers = #tpu.dot_dimension_numbers<[1], [0], [0], [1], [0, 0, 1, 1], [], []>} : vector<24x64xf32>, vector<64x128xf32>, vector<24x128xf32> -> vector<24x128xf32>
    %41 = vector.extract_strided_slice %40 {offsets = [0, 0], sizes = [8, 128], strides = [1, 1]} : vector<24x128xf32> to vector<8x128xf32>
    %c0_39 = arith.constant 0 : index
    %c0_40 = arith.constant 0 : index
    %c0_41 = arith.constant 0 : index
    %42 = vector.load %arg6[%c0_39, %c0_40, %c0_41] : memref<3x128x128xf32, #tpu.memory_space<vmem>>, vector<1x128x128xf32>
    %43 = vector.shape_cast %42 : vector<1x128x128xf32> to vector<128x128xf32>
    %cst_42 = arith.constant dense<0.000000e+00> : vector<8x128xf32>
    %44 = tpu.matmul %41, %43, %cst_42 {dimension_numbers = #tpu.dot_dimension_numbers<[1], [0], [0], [1], [0, 0, 1, 1], [], []>} : vector<8x128xf32>, vector<128x128xf32>, vector<8x128xf32> -> vector<8x128xf32>
    %45 = vector.extract_strided_slice %40 {offsets = [8, 0], sizes = [8, 128], strides = [1, 1]} : vector<24x128xf32> to vector<8x128xf32>
    %c1_43 = arith.constant 1 : index
    %c0_44 = arith.constant 0 : index
    %c0_45 = arith.constant 0 : index
    %46 = vector.load %arg6[%c1_43, %c0_44, %c0_45] : memref<3x128x128xf32, #tpu.memory_space<vmem>>, vector<1x128x128xf32>
    %47 = vector.shape_cast %46 : vector<1x128x128xf32> to vector<128x128xf32>
    %cst_46 = arith.constant dense<0.000000e+00> : vector<8x128xf32>
    %48 = tpu.matmul %45, %47, %cst_46 {dimension_numbers = #tpu.dot_dimension_numbers<[1], [0], [0], [1], [0, 0, 1, 1], [], []>} : vector<8x128xf32>, vector<128x128xf32>, vector<8x128xf32> -> vector<8x128xf32>
    %49 = arith.addf %44, %48 : vector<8x128xf32>
    %50 = vector.extract_strided_slice %40 {offsets = [16, 0], sizes = [8, 128], strides = [1, 1]} : vector<24x128xf32> to vector<8x128xf32>
    %c2_47 = arith.constant 2 : index
    %c0_48 = arith.constant 0 : index
    %c0_49 = arith.constant 0 : index
    %51 = vector.load %arg6[%c2_47, %c0_48, %c0_49] : memref<3x128x128xf32, #tpu.memory_space<vmem>>, vector<1x128x128xf32>
    %52 = vector.shape_cast %51 : vector<1x128x128xf32> to vector<128x128xf32>
    %cst_50 = arith.constant dense<0.000000e+00> : vector<8x128xf32>
    %53 = tpu.matmul %50, %52, %cst_50 {dimension_numbers = #tpu.dot_dimension_numbers<[1], [0], [0], [1], [0, 0, 1, 1], [], []>} : vector<8x128xf32>, vector<128x128xf32>, vector<8x128xf32> -> vector<8x128xf32>
    %54 = arith.addf %49, %53 : vector<8x128xf32>
    %c0_51 = arith.constant 0 : index
    %c0_52 = arith.constant 0 : index
    %55 = vector.load %arg7[%c0_51, %c0_52] : memref<1x128xf32, #tpu.memory_space<vmem>>, vector<1x128xf32>
    %56 = vector.broadcast %55 : vector<1x128xf32> to vector<8x128xf32>
    %57 = arith.addf %54, %56 : vector<8x128xf32>
    %cst_53 = arith.constant 0.000000e+00 : f32
    %58 = vector.broadcast %cst_53 : f32 to vector<8x128xf32>
    %59 = arith.maximumf %57, %58 : vector<8x128xf32>
    %c0_54 = arith.constant 0 : index
    %c0_55 = arith.constant 0 : index
    %60 = vector.load %arg8[%c0_54, %c0_55] : memref<128x128xf32, #tpu.memory_space<vmem>>, vector<128x128xf32>
    %cst_56 = arith.constant dense<0.000000e+00> : vector<8x128xf32>
    %61 = tpu.matmul %59, %60, %cst_56 {dimension_numbers = #tpu.dot_dimension_numbers<[1], [0], [0], [1], [0, 0, 1, 1], [], []>} : vector<8x128xf32>, vector<128x128xf32>, vector<8x128xf32> -> vector<8x128xf32>
    %c0_57 = arith.constant 0 : index
    %c0_58 = arith.constant 0 : index
    %62 = vector.load %arg9[%c0_57, %c0_58] : memref<1x128xf32, #tpu.memory_space<vmem>>, vector<1x128xf32>
    %63 = vector.broadcast %62 : vector<1x128xf32> to vector<8x128xf32>
    %64 = arith.addf %61, %63 : vector<8x128xf32>
    %cst_59 = arith.constant 0.000000e+00 : f32
    %65 = vector.broadcast %cst_59 : f32 to vector<8x128xf32>
    %66 = arith.maximumf %64, %65 : vector<8x128xf32>
    %c0_60 = arith.constant 0 : index
    %c0_61 = arith.constant 0 : index
    %67 = vector.load %arg10[%c0_60, %c0_61] : memref<128x128xf32, #tpu.memory_space<vmem>>, vector<128x128xf32>
    %cst_62 = arith.constant dense<0.000000e+00> : vector<8x128xf32>
    %68 = tpu.matmul %66, %67, %cst_62 {dimension_numbers = #tpu.dot_dimension_numbers<[1], [0], [0], [1], [0, 0, 1, 1], [], []>} : vector<8x128xf32>, vector<128x128xf32>, vector<8x128xf32> -> vector<8x128xf32>
    %c0_63 = arith.constant 0 : index
    %c0_64 = arith.constant 0 : index
    %69 = vector.load %arg11[%c0_63, %c0_64] : memref<1x128xf32, #tpu.memory_space<vmem>>, vector<1x128xf32>
    %70 = vector.broadcast %69 : vector<1x128xf32> to vector<8x128xf32>
    %71 = arith.addf %68, %70 : vector<8x128xf32>
    %cst_65 = arith.constant dense<0xFF800000> : vector<8xf32>
    %72 = vector.multi_reduction <maximumf>, %71, %cst_65 [1] : vector<8x128xf32> to vector<8xf32>
    %73 = vector.shape_cast %72 : vector<8xf32> to vector<8x1xf32>
    %74 = vector.broadcast %73 : vector<8x1xf32> to vector<8x128xf32>
    %75 = arith.subf %71, %74 : vector<8x128xf32>
    %76 = math.exp %75 : vector<8x128xf32>
    %cst_66 = arith.constant dense<0.000000e+00> : vector<8xf32>
    %77 = vector.multi_reduction <add>, %76, %cst_66 [1] : vector<8x128xf32> to vector<8xf32>
    %78 = vector.shape_cast %77 : vector<8xf32> to vector<8x1xf32>
    %79 = math.log %78 : vector<8x1xf32>
    %80 = vector.broadcast %79 : vector<8x1xf32> to vector<8x128xf32>
    %81 = arith.subf %75, %80 : vector<8x128xf32>
    %c0_67 = arith.constant 0 : index
    %c0_68 = arith.constant 0 : index
    %c0_69 = arith.constant 0 : index
    %82 = vector.load %arg12[%c0_67, %c0_68, %c0_69] : memref<1x8x128xf32, #tpu.memory_space<vmem>>, vector<1x8x128xf32>
    %83 = vector.shape_cast %82 : vector<1x8x128xf32> to vector<8x128xf32>
    %84 = vector.shape_cast %81 : vector<8x128xf32> to vector<1x8x128xf32>
    tpu.vector_store %arg12[%c0_67, %c0_68, %c0_69], %84 {strides = array<i32>} : memref<1x8x128xf32, #tpu.memory_space<vmem>>, vector<1x8x128xf32>,
    return
  }
  func.func @transform_0(%arg0: i32) -> (i32, i32, i32) {
    %c0_i32 = arith.constant 0 : i32
    %c0_i32_0 = arith.constant 0 : i32
    %c0_i32_1 = arith.constant 0 : i32
    return %arg0, %c0_i32, %c0_i32_0 : i32, i32, i32
  }
  func.func @transform_1(%arg0: i32) -> (i32, i32, i32) {
    %c0_i32 = arith.constant 0 : i32
    %c0_i32_0 = arith.constant 0 : i32
    %c0_i32_1 = arith.constant 0 : i32
    return %arg0, %c0_i32, %c0_i32_0 : i32, i32, i32
  }
  func.func @transform_2(%arg0: i32) -> (i32, i32, i32) {
    %c0_i32 = arith.constant 0 : i32
    %c0_i32_0 = arith.constant 0 : i32
    %c0_i32_1 = arith.constant 0 : i32
    return %arg0, %c0_i32, %c0_i32_0 : i32, i32, i32
  }
  func.func @transform_3(%arg0: i32) -> (i32, i32, i32) {
    %c0_i32 = arith.constant 0 : i32
    %c0_i32_0 = arith.constant 0 : i32
    %c0_i32_1 = arith.constant 0 : i32
    %c0_i32_2 = arith.constant 0 : i32
    return %c0_i32, %c0_i32_0, %c0_i32_1 : i32, i32, i32
  }
  func.func @transform_4(%arg0: i32) -> (i32, i32, i32) {
    %c0_i32 = arith.constant 0 : i32
    %c0_i32_0 = arith.constant 0 : i32
    %c0_i32_1 = arith.constant 0 : i32
    %c0_i32_2 = arith.constant 0 : i32
    return %c0_i32, %c0_i32_0, %c0_i32_1 : i32, i32, i32
  }
  func.func @transform_5(%arg0: i32) -> (i32, i32, i32) {
    %c0_i32 = arith.constant 0 : i32
    %c0_i32_0 = arith.constant 0 : i32
    %c0_i32_1 = arith.constant 0 : i32
    %c0_i32_2 = arith.constant 0 : i32
    return %c0_i32, %c0_i32_0, %c0_i32_1 : i32, i32, i32
  }
  func.func @transform_6(%arg0: i32) -> (i32, i32) {
    %c0_i32 = arith.constant 0 : i32
    %c0_i32_0 = arith.constant 0 : i32
    %c0_i32_1 = arith.constant 0 : i32
    return %c0_i32, %c0_i32_0 : i32, i32
  }
  func.func @transform_7(%arg0: i32) -> (i32, i32) {
    %c0_i32 = arith.constant 0 : i32
    %c0_i32_0 = arith.constant 0 : i32
    %c0_i32_1 = arith.constant 0 : i32
    return %c0_i32, %c0_i32_0 : i32, i32
  }
  func.func @transform_8(%arg0: i32) -> (i32, i32) {
    %c0_i32 = arith.constant 0 : i32
    %c0_i32_0 = arith.constant 0 : i32
    %c0_i32_1 = arith.constant 0 : i32
    return %c0_i32, %c0_i32_0 : i32, i32
  }
  func.func @transform_9(%arg0: i32) -> (i32, i32) {
    %c0_i32 = arith.constant 0 : i32
    %c0_i32_0 = arith.constant 0 : i32
    %c0_i32_1 = arith.constant 0 : i32
    return %c0_i32, %c0_i32_0 : i32, i32
  }
  func.func @transform_10(%arg0: i32) -> (i32, i32) {
    %c0_i32 = arith.constant 0 : i32
    %c0_i32_0 = arith.constant 0 : i32
    %c0_i32_1 = arith.constant 0 : i32
    return %c0_i32, %c0_i32_0 : i32, i32
  }
  func.func @transform_11(%arg0: i32) -> (i32, i32, i32) {
    %c0_i32 = arith.constant 0 : i32
    %c0_i32_0 = arith.constant 0 : i32
    %c0_i32_1 = arith.constant 0 : i32
    return %arg0, %c0_i32, %c0_i32_0 : i32, i32, i32
  }
}

</mosaic_0001>

<bundles_post_ra>
// kernel: model_forward.1
= control target key start
LH: loop header
LB: loop body
LE: loop exit
PB: predicated region body
PF: predicated region fallthrough
CT: control target
= control target key end

     0   :  { %s4010_s0 = inlined_call_operand.hbm [shape: f32[8,64,64], index: 0, kind: input, shape index: {}]   ;;  %s4011_s1 = inlined_call_operand.hbm [shape: f32[8,64,128], index: 1, kind: input, shape index: {}]   ;;  %s4012_s2 = inlined_call_operand.hbm [shape: f32[8,24,64], index: 2, kind: input, shape index: {}]   ;;  %s4013_s3 = inlined_call_operand.hbm [shape: f32[3,128,128], index: 3, kind: input, shape index: {}]   ;;  %s4014_s4 = inlined_call_operand.vmem [shape: f32[3,1,128], index: 4, kind: input, shape index: {}]   ;;  %s4015_s5 = inlined_call_operand.hbm [shape: f32[3,128,128], index: 5, kind: input, shape index: {}]   ;;  %s4016_s6 = inlined_call_operand.vmem [shape: f32[1,128], index: 6, kind: input, shape index: {}]   ;;  %s4017_s7 = inlined_call_operand.hbm [shape: f32[128,128], index: 7, kind: input, shape index: {}]   ;;  %s4018_s8 = inlined_call_operand.vmem [shape: f32[1,128], index: 8, kind: input, shape index: {}]   ;;  %s4019_s9 = inlined_call_operand.hbm [shape: f32[128,128], index: 9, kind: input, shape index: {}]   ;;  %s4020_s10 = inlined_call_operand.vmem [shape: f32[1,128], index: 10, kind: input, shape index: {}]   ;;  %s4021_s11 = inlined_call_operand.hbm [shape: f32[8,8,128], index: 11, kind: output, shape index: {}]  }
   0x1   :  { %4048 = sst [smem:[#allocation26_spill]] %s4011_s1 }
   0x2   :  { %4049 = sst [smem:[#allocation27_spill]] %s4013_s3 }
   0x3   :  { %4050 = sst [smem:[#allocation28_spill]] %s4017_s7 }
   0x4   :  { %4051 = sst [smem:[#allocation29_spill]] %s4018_s8 }
   0x5   :  { %4052 = sst [smem:[#allocation30_spill]] %s4020_s10 }
   0x6   :  { %4053 = sst [smem:[#allocation31_spill]] %s4021_s11 }
   0x7   :  { %16 = vsyncpa [#allocation3], 0 }
   0x8   :  { %18 = vsyncpa [#allocation3 + $0x1], 0 }
   0x9   :  { %19 = vsyncpa [#allocation6], 0 }
   0xa   :  { %21 = vsyncpa [#allocation6 + $0x1], 0 }
   0xb   :  { %22 = vsyncpa [#allocation9], 0 }
   0xc   :  { %23 = vsyncpa [#allocation12], 0 }
   0xd   :  { %24 = vsyncpa [#allocation4], 0 }
   0xe   :  { %26 = vsyncpa [#allocation4 + $0x1], 0  ;;  %s3468_s17 = smov 0   ;;  %s3470_s18 = smov 0  }
   0xf   :  { %s3472_s19 = smov 0   ;;  %s3474_s20 = smov 0  }
  0x10 LB: > { %4054 = sst [smem:[#allocation20_spill]] %s3381_s17  ;;  %s3489_s21 = sadd.s32 4294967295, %s3393_s20   ;;  %s3393_s20 = sphi %s3474_s20, %s4094_s20   ;;  %s3389_s19 = sphi %s3472_s19, %s4096_s19   ;;  %s3385_s18 = sphi %s3470_s18, %s4098_s18   ;;  %s3381_s17 = sphi %s3468_s17, %s4097_s17  }
  0x11   : > { %4055 = sst [smem:[#allocation21_spill]] %s3389_s19  ;;  %s2033_s22 = sadd.s32 4294967294, %s3393_s20  }
  0x12   : > { %p52_p0 = scmp.ne.s32.totalorder %s3385_s18, %s3381_s17  ;;  %p4022_p1 = scmp.eq.s32.totalorder %s3489_s21, 0 }
  0x13   : > { %p302_p3 = scmp.eq.s32.totalorder %s2033_s22, 7  ;;  %p2034_p5 = scmp.ge.s32.totalorder %s3393_s20, 1 }
  0x14   : > { %p3498_p4 = por %p4022_p1, %p52_p0  ;;  %p309_p7 = scmp.lt.s32.totalorder %s3393_s20, 9 }
  0x15   : > { %p3503_p6 = por %p302_p3, %p52_p0  ;;  %s3395_s26 = smov [#allocation8]  }
  0x16   : > { %s4056_s23 = scalar_select %p3498_p4, 1, 0 }
  0x17   : > { %s4057_s24 = scalar_select %p3503_p6, 1, 0 }
  0x18   : > { %p3508_p8 = pnand %p2034_p5, %p309_p7  ;;  %s321_s27 = sshll.u32 %s3395_s26, 4  ;;  %s322_s27 = int_to_ptr.vmem [resolvable:$true] %s321_s27 }
  0x19   : > { %4058 = sst [smem:[#allocation22_spill]] %s4057_s24  ;;  %s3396_s29 = smov [#allocation11]  }
  0x1a   : > { %s4059_s25 = scalar_select %p3508_p8, 1, 0 }
  0x1b   : > { %p3031_p9 = pneg %p3508_p8  ;;  %s353_s30 = sshll.u32 %s3396_s29, 4  ;;  %s3520_s30 = int_to_ptr.vmem [resolvable:$true] %s353_s30 }
  0x1c   : > { %s4061_s3 = sld [smem:[#allocation27_spill]] }
  0x1d   : > { %p3516_p10 = pnand %p3031_p9, %p4022_p1 }
  0x1f   : > { %s4060_s28 = scalar_select %p3516_p10, 1, 0 }
  0x20   : > { %p3530_p12 = pneg %p3516_p10 }
  0x22   : > { %s3113_s14 = scalar_lea.hbm %s4061_s3, 6144 }
  0x23   : > { %p3114_p11 = scmp.ne.s32.totalorder %s4061_s3, %s3113_s14  ;;  %p3120_p3 = scmp.lt.u32.totalorder %s3113_s14, %s4061_s3 }
  0x24   : > { %s4062_s22 = scalar_select %p3530_p12, 1, 0 }
  0x25   : > { %p3116_p13 = pnand %p3530_p12, %p3114_p11 }
  0x27   : > { %p3117_p0 = pneg %p3116_p13 }
  0x29   : > { %p3122_p5 = pnand %p3120_p3, %p3117_p0 }
  0x2b   : > { %3125 = shalt.err (!%p3122_p5)
}
  0x2c   : > { %s3126_s12 = scalar_lea.vmem %s322_s27, 6144  ;;  %p3134_p2 = scmp.lt.s32.totalorder %s322_s27, %s322_s27 }
  0x2d   : > { %p3127_p7 = scmp.ne.s32.totalorder %s322_s27, %s3126_s12  ;;  %p3135_p6 = scmp.lt.s32.totalorder %s3126_s12, %s3126_s12 }
  0x2f   : > { %p3129_p9 = pnand %p3127_p7, %p3530_p12  ;;  %p3136_p4 = por %p3135_p6, %p3134_p2 }
  0x31   : > { %p3130_p1 = pneg %p3129_p9 }
  0x33   : > { %p3137_p8 = pnand %p3136_p4, %p3130_p1 }
  0x35   : > { %3140 = shalt.err (!%p3137_p8)
}
  0x36   : > { %s4028_s13 = smov 128   ;;  %s4030_s15 = smov 8  }
  0x37   : > { %3034 = dma.hbm_to_vmem [thread:$0]  (!%p3516_p10), %s4061_s3, 6144, %s322_s27, [#allocation9], %s4028_s13, %s4028_s13, %s4030_s15  }
  0x38   : > { %s4063_s7 = sld [smem:[#allocation28_spill]] }
  0x3e   : > { %s3141_s24 = scalar_lea.hbm %s4063_s7, 2048 }
  0x3f   : > { %p3142_p1 = scmp.ne.s32.totalorder %s4063_s7, %s3141_s24  ;;  %p3148_p6 = scmp.lt.u32.totalorder %s3141_s24, %s4063_s7 }
  0x41   : > { %p3144_p2 = pnand %p3142_p1, %p3530_p12 }
  0x43   : > { %p3145_p4 = pneg %p3144_p2 }
  0x45   : > { %p3150_p8 = pnand %p3148_p6, %p3145_p4 }
  0x47   : > { %3153 = shalt.err (!%p3150_p8)
}
  0x48   : > { %s3154_s27 = scalar_lea.vmem %s3520_s30, 2048  ;;  %p3162_p3 = scmp.lt.s32.totalorder %s3520_s30, %s3520_s30 }
  0x49   : > { %p3155_p11 = scmp.ne.s32.totalorder %s3520_s30, %s3154_s27  ;;  %p3163_p5 = scmp.lt.s32.totalorder %s3154_s27, %s3154_s27 }
  0x4b   : > { %p3157_p13 = pnand %p3155_p11, %p3530_p12  ;;  %p3164_p7 = por %p3163_p5, %p3162_p3 }
  0x4d   : > { %p3158_p0 = pneg %p3157_p13 }
  0x4f   : > { %p3165_p9 = pnand %p3164_p7, %p3158_p0 }
  0x51   : > { %3168 = shalt.err (!%p3165_p9)
}
  0x52   : > { %3040 = dma.hbm_to_vmem [thread:$0]  (!%p3516_p10), %s4063_s7, 2048, %s3520_s30, [#allocation12], %s4028_s13, %s4028_s13, %s4030_s15  }
  0x53   : > { %s3576_s17 = sadd.s32 1, %s3393_s20   ;;  %s39_s24 = sadd.s32 1, %s3389_s19 }
  0x54   : > { %4064 = sst [smem:[#allocation23_spill]] %s3576_s17  ;;  %s36_s14 = ssub.s32 %s3393_s20, %s3576_s17 }
  0x55   : > { %p46_p1 = scmp.ne.s32.totalorder %s3389_s19, %s3385_s18  ;;  %p37_p2 = scmp.eq.s32.totalorder %s36_s14, 0 }
  0x56   : > { %p47_p4 = scmp.eq.s32.totalorder %s3393_s20, 0  ;;  %p4065_p6 = scmp.eq.s32.totalorder %s3489_s21, 7 }
  0x57   : > { %p3062_p11 = scmp.lt.s32.totalorder %s3393_s20, 8  ;;  %s3595_s29 = sand.u32 1, %s3389_s19  }
  0x58   : > { %p3586_p8 = por %p4065_p6, %p46_p1  ;;  %p48_p13 = por %p47_p4, %p46_p1 }
  0x59   : > { %s3592_s26 = scalar_select %p37_p2, %s3389_s19, %s39_s24  }
  0x5a   : > { %s4066_s16 = scalar_select %p3586_p8, 1, 0 }
  0x5b   : > { %4068 = sst [smem:[#allocation25_spill]] %s3592_s26  ;;  %s4033_s30 = sshll.u32 %s3595_s29, 6 }
  0x5c   : > { %4067 = sst [smem:[#allocation24_spill]] %s4066_s16  ;;  %s4034_s12 = sshll.u32 %s3393_s20, 10 }
  0x5d   : > { %p3599_p0 = pnand %p3062_p11, %p48_p13  ;;  %s407_s10 = sand.u32 1, %s3393_s20  }
  0x5e   : > { %s4070_s1 = sld [smem:[#allocation26_spill]]  ;;  %s411_s24 = scalar_lea.vmem [#allocation5], %s4033_s30 }
  0x5f   : > { %s4069_s27 = scalar_select %p3599_p0, 1, 0 }
  0x60   : > { %s418_s15 = sshll.u32 %s411_s24, 4  ;;  %s3399_s3 = smov [#allocation10]   ;;  %s3613_s15 = int_to_ptr.vmem [resolvable:$true] %s418_s15 }
  0x61   : > { %s3615_s7 = sshll.u32 %s3399_s3, 4  ;;  %s3617_s26 = scalar_lea.sflag [#allocation6], %s407_s10  ;;  %s338_s7 = int_to_ptr.vmem [resolvable:$true] %s3615_s7 }
  0x62   : > { %p3623_p5 = pneg %p3599_p0 }
  0x64   : > { %s3609_s13 = scalar_lea.hbm %s4070_s1, %s4034_s12  ;;  %s3174_s30 = scalar_lea.hbm %s4070_s1, 8192 }
  0x65   : > { %s3169_s19 = scalar_lea.hbm %s3609_s13, 1024  ;;  %p3175_p1 = scmp.lt.u32.totalorder %s3609_s13, %s4070_s1 }
  0x66   : > { %p3170_p3 = scmp.ne.s32.totalorder %s3609_s13, %s3169_s19  ;;  %p3176_p2 = scmp.lt.u32.totalorder %s3174_s30, %s3169_s19 }
  0x67   : > { %s4071_s11 = scalar_select %p3623_p5, 1, 0 }
  0x68   : > { %p3172_p7 = pnand %p3623_p5, %p3170_p3  ;;  %p3177_p4 = por %p3176_p2, %p3175_p1 }
  0x69   : > { %p3178_p6 = scmp.lt.u32.totalorder %s3169_s19, %s3609_s13 }
  0x6a   : > { %p3173_p9 = pneg %p3172_p7 }
  0x6b   : > { %p3179_p11 = por %p3178_p6, %p3177_p4 }
  0x6d   : > { %p3180_p13 = pnand %p3179_p11, %p3173_p9 }
  0x6f   : > { %3183 = shalt.err (!%p3180_p13)
}
  0x70   : > { %s3184_s10 = scalar_lea.vmem %s3613_s15, 1024  ;;  %s3400_s14 = smov [#allocation5]  }
  0x71   : > { %p3185_p3 = scmp.ne.s32.totalorder %s3613_s15, %s3184_s10  ;;  %s3189_s24 = sshll.u32 %s3400_s14, 4  ;;  %s3190_s24 = int_to_ptr.vmem [resolvable:$false] %s3189_s24 }
  0x72   : > { %s3191_s12 = scalar_lea.vmem %s3190_s24, 2048  ;;  %p3192_p10 = scmp.lt.s32.totalorder %s3613_s15, %s3190_s24 }
  0x73   : > { %p3187_p7 = pnand %p3185_p3, %p3623_p5  ;;  %p3193_p12 = scmp.lt.s32.totalorder %s3191_s12, %s3184_s10 }
  0x75   : > { %p3188_p8 = pneg %p3187_p7  ;;  %p3194_p1 = por %p3193_p12, %p3192_p10 }
  0x77   : > { %p3195_p2 = pnand %p3194_p1, %p3188_p8 }
  0x79   : > { %3198 = shalt.err (!%p3195_p2)
}
  0x7a   : > { %s4072_s19 = smov 8   ;;  %s4073_s30 = smov 128  }
  0x7b   : > { %3050 = dma.hbm_to_vmem [thread:$0]  (!%p3599_p0), %s3609_s13, 1024, %s3613_s15, %s3617_s26, %s4073_s30, %s4073_s30, %s4072_s19  }
  0x7c   : > { %s3199_s24 = scalar_lea.hbm %s4015_s5, 6144  ;;  %p4074_p12 = scmp.ne.s32.totalorder %s4062_s22, 0 }
  0x7d   : > { %p3200_p10 = scmp.ne.s32.totalorder %s4015_s5, %s3199_s24  ;;  %p3206_p4 = scmp.lt.u32.totalorder %s3199_s24, %s4015_s5 }
  0x7f   : > { %p3202_p8 = pnand %p3200_p10, %p4074_p12 }
  0x81   : > { %p3203_p9 = pneg %p3202_p8 }
  0x83   : > { %p3208_p6 = pnand %p3206_p4, %p3203_p9 }
  0x85   : > { %3211 = shalt.err (!%p3208_p6)
}
  0x86   : > { %s3212_s16 = scalar_lea.vmem %s338_s7, 6144  ;;  %p3220_p7 = scmp.lt.s32.totalorder %s338_s7, %s338_s7 }
  0x87   : > { %p3213_p11 = scmp.ne.s32.totalorder %s338_s7, %s3212_s16  ;;  %p3221_p1 = scmp.lt.s32.totalorder %s3212_s16, %s3212_s16 }
  0x89   : > { %p3215_p13 = pnand %p3213_p11, %p4074_p12  ;;  %p3222_p2 = por %p3221_p1, %p3220_p7 }
  0x8b   : > { %p3216_p3 = pneg %p3215_p13 }
  0x8d   : > { %p3223_p0 = pnand %p3222_p2, %p3216_p3 }
  0x8f   : > { %3226 = shalt.err (!%p3223_p0)
}
  0x90   : > { %p4075_p10 = scmp.ne.s32.totalorder %s4060_s28, 0  ;;  %s3401_s15 = smov [#allocation13]  }
  0x91   : > { %s369_s17 = sshll.u32 %s3401_s15, 4  ;;  %s3227_s16 = scalar_lea.hbm %s4019_s9, 2048  ;;  %s370_s17 = int_to_ptr.vmem [resolvable:$true] %s369_s17 }
  0x92   : > { %3037 = dma.hbm_to_vmem [thread:$0]  (!%p4075_p10), %s4015_s5, 6144, %s338_s7, [#allocation9], %s4073_s30, %s4073_s30, %s4072_s19  }
  0x93   : > { %p3228_p0 = scmp.ne.s32.totalorder %s4019_s9, %s3227_s16  ;;  %p3234_p4 = scmp.lt.u32.totalorder %s3227_s16, %s4019_s9 }
  0x95   : > { %p3230_p8 = pnand %p3228_p0, %p4074_p12 }
  0x97   : > { %p3231_p9 = pneg %p3230_p8 }
  0x99   : > { %p3236_p6 = pnand %p3234_p4, %p3231_p9 }
  0x9b   : > { %3239 = shalt.err (!%p3236_p6)
}
  0x9c   : > { %s3240_s7 = scalar_lea.vmem %s370_s17, 2048  ;;  %p3248_p7 = scmp.lt.s32.totalorder %s370_s17, %s370_s17 }
  0x9d   : > { %p3241_p11 = scmp.ne.s32.totalorder %s370_s17, %s3240_s7  ;;  %p3249_p1 = scmp.lt.s32.totalorder %s3240_s7, %s3240_s7 }
  0x9f   : > { %p3243_p13 = pnand %p3241_p11, %p4074_p12  ;;  %p3250_p2 = por %p3249_p1, %p3248_p7 }
  0xa1   : > { %p3244_p3 = pneg %p3243_p13 }
  0xa3   : > { %p3251_p5 = pnand %p3250_p2, %p3244_p3 }
  0xa5   : > { %3254 = shalt.err (!%p3251_p5)
}
  0xa6   : > { %3043 = dma.hbm_to_vmem [thread:$0]  (!%p4075_p10), %s4019_s9, 2048, %s370_s17, [#allocation12], %s4073_s30, %s4073_s30, %s4072_s19  }
  0xa7   : > { %s4076_s22 = sshll.u32 %s3393_s20, 10  ;;  %s4077_s14 = sshll.u32 %s3595_s29, 6 }
  0xa8   : > { %s3698_s3 = scalar_lea.hbm %s4010_s0, %s4076_s22  ;;  %s390_s28 = scalar_lea.vmem [#allocation2], %s4077_s14 }
  0xa9   : > { %s397_s16 = sshll.u32 %s390_s28, 4  ;;  %s3004_s24 = smul.u32 24, %s3595_s29  ;;  %s3702_s16 = int_to_ptr.vmem [resolvable:$true] %s397_s16 }
  0xaa   : > { %s387_s10 = scalar_lea.sflag [#allocation3], %s3595_s29  ;;  %s3255_s12 = scalar_lea.hbm %s3698_s3, 1024 }
  0xab   : > { %p3256_p5 = scmp.ne.s32.totalorder %s3698_s3, %s3255_s12  ;;  %p4078_p12 = scmp.ne.s32.totalorder %s4071_s11, 0 }
  0xac   : > { %s3260_s8 = scalar_lea.hbm %s4010_s0, 8192  ;;  %p3261_p8 = scmp.lt.u32.totalorder %s3698_s3, %s4010_s0 }
  0xad   : > { %p3258_p10 = pnand %p3256_p5, %p4078_p12  ;;  %p3262_p9 = scmp.lt.u32.totalorder %s3260_s8, %s3255_s12 }
  0xae   : > { %p3264_p6 = scmp.lt.u32.totalorder %s3255_s12, %s3698_s3 }
  0xaf   : > { %p3259_p0 = pneg %p3258_p10  ;;  %p3263_p4 = por %p3262_p9, %p3261_p8 }
  0xb1   : > { %p3265_p11 = por %p3264_p6, %p3263_p4 }
  0xb3   : > { %p3266_p13 = pnand %p3265_p11, %p3259_p0 }
  0xb5   : > { %3269 = shalt.err (!%p3266_p13)
}
  0xb6   : > { %s3270_s13 = scalar_lea.vmem %s3702_s16, 1024  ;;  %s3402_s15 = smov [#allocation2]  }
  0xb7   : > { %p3271_p3 = scmp.ne.s32.totalorder %s3702_s16, %s3270_s13  ;;  %s3275_s14 = sshll.u32 %s3402_s15, 4  ;;  %s3276_s14 = int_to_ptr.vmem [resolvable:$false] %s3275_s14 }
  0xb8   : > { %s3277_s28 = scalar_lea.vmem %s3276_s14, 2048  ;;  %p3278_p2 = scmp.lt.s32.totalorder %s3702_s16, %s3276_s14 }
  0xb9   : > { %p3273_p7 = pnand %p3271_p3, %p4078_p12  ;;  %p3279_p5 = scmp.lt.s32.totalorder %s3277_s28, %s3270_s13 }
  0xbb   : > { %p3274_p1 = pneg %p3273_p7  ;;  %p3280_p10 = por %p3279_p5, %p3278_p2 }
  0xbd   : > { %p3281_p8 = pnand %p3280_p10, %p3274_p1 }
  0xbf   : > { %3284 = shalt.err (!%p3281_p8)
}
  0xc0   : > { %p4079_p0 = scmp.ne.s32.totalorder %s4069_s27, 0  ;;  %s3005_s12 = smul.u32 384, %s3393_s20 }
  0xc1   : > { %s432_s17 = scalar_lea.vmem [#allocation7], %s3004_s24 }
  0xc2   : > { %3047 = dma.hbm_to_vmem [thread:$0]  (!%p4079_p0), %s3698_s3, 1024, %s3702_s16, %s387_s10, %s4073_s30, %s4073_s30, %s4072_s19  }
  0xc3   : > { %s439_s7 = sshll.u32 %s432_s17, 4  ;;  %s3738_s22 = scalar_lea.hbm %s4012_s2, %s3005_s12  ;;  %s3740_s7 = int_to_ptr.vmem [resolvable:$true] %s439_s7 }
  0xc4   : > { %s3285_s13 = scalar_lea.hbm %s3738_s22, 384  ;;  %s3290_s16 = scalar_lea.hbm %s4012_s2, 3072 }
  0xc5   : > { %p3286_p9 = scmp.ne.s32.totalorder %s3738_s22, %s3285_s13  ;;  %p3291_p11 = scmp.lt.u32.totalorder %s3738_s22, %s4012_s2 }
  0xc6   : > { %p3292_p13 = scmp.lt.u32.totalorder %s3290_s16, %s3285_s13  ;;  %p3294_p7 = scmp.lt.u32.totalorder %s3285_s13, %s3738_s22 }
  0xc7   : > { %p3288_p4 = pnand %p3286_p9, %p4078_p12 }
  0xc8   : > { %p3293_p3 = por %p3292_p13, %p3291_p11 }
  0xc9   : > { %p3289_p6 = pneg %p3288_p4 }
  0xca   : > { %p3295_p1 = por %p3294_p7, %p3293_p3 }
  0xcc   : > { %p3296_p2 = pnand %p3295_p1, %p3289_p6 }
  0xce   : > { %3299 = shalt.err (!%p3296_p2)
}
  0xcf   : > { %s3300_s15 = scalar_lea.vmem %s3740_s7, 384  ;;  %s3403_s14 = smov [#allocation7]  }
  0xd0   : > { %p3301_p5 = scmp.ne.s32.totalorder %s3740_s7, %s3300_s15  ;;  %s3305_s28 = sshll.u32 %s3403_s14, 4  ;;  %s3306_s28 = int_to_ptr.vmem [resolvable:$false] %s3305_s28 }
  0xd1   : > { %s3307_s12 = scalar_lea.vmem %s3306_s28, 768  ;;  %p3308_p9 = scmp.lt.s32.totalorder %s3740_s7, %s3306_s28 }
  0xd2   : > { %p3303_p10 = pnand %p3301_p5, %p4078_p12  ;;  %p3309_p4 = scmp.lt.s32.totalorder %s3307_s12, %s3300_s15 }
  0xd4   : > { %p3304_p8 = pneg %p3303_p10  ;;  %p3310_p11 = por %p3309_p4, %p3308_p9 }
  0xd6   : > { %p3311_p13 = pnand %p3310_p11, %p3304_p8 }
  0xd8   : > { %3314 = shalt.err (!%p3311_p13)
}
  0xd9   : > { %3053 = dma.hbm_to_vmem [thread:$0]  (!%p4079_p0), %s3738_s22, 384, %s3740_s7, %s3617_s26, %s4073_s30, %s4073_s30, %s4072_s19  }
  0xda   : > { %p4080_p12 = scmp.ne.s32.totalorder %s4059_s25, 0 }
  0xdb   : > { %s3770_s11 = sand.u32 (!%p4080_p12), 1, %s3385_s18   ;;  %p4081_p6 = scmp.ne.s32.totalorder (!%p4080_p12), %s4056_s23, 0 }
  0xdc   : > { %451 = sbr.rel (%p4080_p12) target bundleno = 2860 (0xb2c), region = 64  ;;  %s2048_s17 = sshll.u32 (!%p4080_p12), %s3770_s11, 6 }
  0xdd   : > { %s454_s8 = scalar_lea.sflag (!%p4080_p12), [#allocation3], %s3770_s11  ;;  %s3774_s1 = scalar_lea.vmem (!%p4080_p12), [#allocation2], %s2048_s17 }
  0xe3   : > { %3360 = dma.done.wait (%p4081_p6), %s454_s8, 1024  }
  0xe4   : > { %3362 = vsyncadd (%p4081_p6), %s454_s8, 4294966272  ;;  %s462_s26 = sand.u32 1, %s3489_s21   ;;  %s3781_s27 = scalar_lea.vmem [#allocation5], %s2048_s17 }
  0xe5   : > { %s463_s25 = scalar_lea.sflag [#allocation6], %s462_s26 }
  0xe6   : > { %3364 = dma.done.wait (%p4081_p6), %s463_s25, 1408  }
  0xe7   : > { %3366 = vsyncadd (%p4081_p6), %s463_s25, 4294965888  ;;  %s3006_s19 = smul.u32 24, %s3770_s11  ;;  %p4082_p0 = scmp.eq.s32.totalorder %s3489_s21, 0 }
  0xe9   : > { %s3788_s30 = scalar_lea.vmem [#allocation7], %s3006_s19 }
  0xea   : > { %3368 = dma.done.wait (%p4082_p0), [#allocation9], 12288   ;;  %p4083_p3 = pmov %p4082_p0 }
  0xeb   : > { %p4084_p7 = pmov %p4082_p0 }
  0xec   : > { %3370 = vsyncadd (%p4083_p3), [#allocation9], 4294955008 }
  0xed   : > { %3372 = dma.done.wait (%p4084_p7), [#allocation12], 4096   ;;  %p4085_p1 = pmov %p4082_p0 }
  0xee   : > { %v548_v0 = vld [vmem:[#allocation8] sm:$0xff]  ;;  %v549_v1 = vld [vmem:[#allocation8 + $0x8] sm:$0xff]  ;;  %v550_v2 = vld [vmem:[#allocation8 + $0x10] sm:$0xff]  ;;  %vm684_vm0 = vcmask 523264   ;;  %vm3405_vm1 = vmmov 0   ;;  %s4086_s14 = sld [smem:[#allocation29_spill]] }
  0xef   : > { %3374 = vsyncadd (%p4085_p1), [#allocation12], 4294963200  ;;  %v2728_v3 = vpack.c.bf16 %v549_v1, %v548_v0  ;;  %v551_v4 = vld [vmem:[#allocation8 + $0x18] sm:$0xff]  ;;  %v552_v6 = vld [vmem:[#allocation8 + $0x20] sm:$0xff]  ;;  %s4087_s17 = sld [smem:[#allocation30_spill]]  ;;  %s4088_s8 = sld [smem:[#allocation24_spill]] }
  0xf0   : > { %v2732_v5 = vpack.c.bf16 %v551_v4, %v550_v2  ;;  %v553_v7 = vld [vmem:[#allocation8 + $0x28] sm:$0xff]  ;;  %v540_v9 = vld [vmem:[%s3781_s27] sm:$0xff]  ;;  %v555_v11 = vld [vmem:[#allocation8 + $0x38] sm:$0xff]  ;;  %s2091_s26 = sshll.u32 %s3489_s21, 7  ;;  %s4089_s23 = sld [smem:[#allocation31_spill]] }
  0xf1   : > { %2729 = vmatprep.subr.bf16.mxu0 %v2728_v3  ;;  %v2736_v8 = vpack.c.bf16 %v553_v7, %v552_v6  ;;  %v554_v10 = vld [vmem:[#allocation8 + $0x30] sm:$0xff]  ;;  %2344 = vmatprep.mubr.f32.mxu0 %v540_v9  ;;  %v556_v13 = vld [vmem:[#allocation8 + $0x40] sm:$0xff]  ;;  %v557_v14 = vld [vmem:[#allocation8 + $0x48] sm:$0xff]  ;;  %s1869_s22 = scalar_lea.sflag [#allocation4], %s3770_s11  ;;  %s3407_s21 = smov [#allocation14]  }
  0xf2   : > { %2731 = vmatpush3.bf16.msra.mxu0 %v2728_v3  ;;  %v2740_v12 = vpack.c.bf16 %v555_v11, %v554_v10  ;;  %v2744_v15 = vpack.c.bf16 %v557_v14, %v556_v13  ;;  %v558_v16 = vld [vmem:[#allocation8 + $0x50] sm:$0xff]  ;;  %v559_v17 = vld [vmem:[#allocation8 + $0x58] sm:$0xff]  ;;  %v560_v19 = vld [vmem:[#allocation8 + $0x60] sm:$0xff]  ;;  %s3319_s3 = sshll.u32 %s3407_s21, 4  ;;  %s3320_s3 = int_to_ptr.vmem [resolvable:$false] %s3319_s3 }
  0xf3   : > { %2733 = vmatprep.subr.bf16.mxu0 %v2732_v5  ;;  %v2748_v18 = vpack.c.bf16 %v559_v17, %v558_v16  ;;  %v561_v20 = vld [vmem:[#allocation8 + $0x68] sm:$0xff]  ;;  %v562_v22 = vld [vmem:[#allocation8 + $0x70] sm:$0xff]  ;;  %v563_v23 = vld [vmem:[#allocation8 + $0x78] sm:$0xff]  ;;  %s3321_s29 = scalar_lea.vmem %s3320_s3, 256 }
  0xf4   : > { %v2752_v21 = vpack.c.bf16 %v561_v20, %v560_v19  ;;  %v2756_v24 = vpack.c.bf16 %v563_v23, %v562_v22  ;;  %v541_v25 = vld [vmem:[%s3781_s27 + $0x8] sm:$0xff]  ;;  %v542_v26 = vld [vmem:[%s3781_s27 + $0x10] sm:$0xff]  ;;  %v543_v27 = vld [vmem:[%s3781_s27 + $0x18] sm:$0xff] }
  0xf5   : > { %v544_v28 = vld [vmem:[%s3781_s27 + $0x20] sm:$0xff]  ;;  %v545_v29 = vld [vmem:[%s3781_s27 + $0x28] sm:$0xff]  ;;  %v546_v30 = vld [vmem:[%s3781_s27 + $0x30] sm:$0xff]  ;;  %p4090_p5 = scmp.ne.s32.totalorder %s4088_s8, 0 }
  0xf6   : > { %2735 = vmatpush3.bf16.msra.mxu0 %v2732_v5  ;;  %v547_v31 = vld [vmem:[%s3781_s27 + $0x38] sm:$0xff]  ;;  %v3807_v32 = vld [vmem:[%s3774_s1] sm:$0xff]  ;;  %v823_v42 = vld [vmem:[#allocation8 + $0x80] sm:$0xff]  ;;  %s3967_s7 = scalar_lea.hbm %s4089_s23, %s2091_s26 }
  0xf7   : > { %2737 = vmatprep.subr.bf16.mxu0 %v2736_v8  ;;  %2372 = vmatprep.mubr.msk.f32.mxu1 %vm684_vm0, %v3807_v32  ;;  %v824_v43 = vld [vmem:[#allocation8 + $0x88] sm:$0xff]  ;;  %v825_v48 = vld [vmem:[#allocation8 + $0x90] sm:$0xff]  ;;  %v826_v49 = vld [vmem:[#allocation8 + $0x98] sm:$0xff] }
  0xf8   : > { %v2776_v47 = vpack.c.bf16 %v824_v43, %v823_v42  ;;  %v3812_v50 = vld [vmem:[%s3774_s1 + $0x8] sm:$0xff]  ;;  %v3815_v51 = vld [vmem:[%s3774_s1 + $0x10] sm:$0xff]  ;;  %v2780_v52 = vpack.c.bf16 %v826_v49, %v825_v48  ;;  %v828_v54 = vld [vmem:[#allocation8 + $0xa8] sm:$0xff] }
  0xf9   : > { %v827_v53 = vld [vmem:[#allocation8 + $0xa0] sm:$0xff]  ;;  %v3822_v55 = vld [vmem:[%s3774_s1 + $0x18] sm:$0xff]  ;;  %v3825_v56 = vld [vmem:[%s3774_s1 + $0x20] sm:$0xff] }
  0xfa   : > { %2739 = vmatpush3.bf16.msra.mxu0 %v2736_v8  ;;  %v2784_v57 = vpack.c.bf16 %v828_v54, %v827_v53  ;;  %v829_v58 = vld [vmem:[#allocation8 + $0xb0] sm:$0xff]  ;;  %v830_v59 = vld [vmem:[#allocation8 + $0xb8] sm:$0xff]  ;;  %v3835_v61 = vld [vmem:[%s3774_s1 + $0x30] sm:$0xff] }
  0xfb   : > { %2741 = vmatprep.subr.bf16.mxu0 %v2740_v12  ;;  %v3832_v60 = vld [vmem:[%s3774_s1 + $0x28] sm:$0xff]  ;;  %v2788_v62 = vpack.c.bf16 %v830_v59, %v829_v58  ;;  %v831_v63 = vld [vmem:[#allocation8 + $0xc0] sm:$0xff]  ;;  %v832_v0 = vld [vmem:[#allocation8 + $0xc8] sm:$0xff] }
  0xfc   : > { %v3842_v1 = vld [vmem:[%s3774_s1 + $0x38] sm:$0xff]  ;;  %v2792_v2 = vpack.c.bf16 %v832_v0, %v831_v63  ;;  %v833_v3 = vld [vmem:[#allocation8 + $0xd0] sm:$0xff]  ;;  %v834_v4 = vld [vmem:[#allocation8 + $0xd8] sm:$0xff]  ;;  %s2054_s1 = sshll.u32 %s3770_s11, 3 }
  0xfd   : > { %v2796_v5 = vpack.c.bf16 %v834_v4, %v833_v3  ;;  %v835_v6 = vld [vmem:[#allocation8 + $0xe0] sm:$0xff]  ;;  %v836_v7 = vld [vmem:[#allocation8 + $0xe8] sm:$0xff]  ;;  %v837_v9 = vld [vmem:[#allocation8 + $0xf0] sm:$0xff]  ;;  %s539_s25 = scalar_lea.vmem [#allocation14], %s2054_s1 }
  0xfe   : > { %2743 = vmatpush3.bf16.msra.mxu0 %v2740_v12  ;;  %v2800_v8 = vpack.c.bf16 %v836_v7, %v835_v6  ;;  %v838_v10 = vld [vmem:[#allocation8 + $0xf8] sm:$0xff]  ;;  %v2055_v12 = vld [vmem:[%s4014_s4] ss:$0 sm:$0xff]  ;;  %v1075_v53 = vld [vmem:[#allocation8 + $0x148] sm:$0xff]  ;;  %s1882_s27 = sshll.u32 %s539_s25, 4  ;;  %s3969_s27 = int_to_ptr.vmem [resolvable:$true] %s1882_s27 }
  0xff   : > { %2745 = vmatprep.subr.bf16.mxu0 %v2744_v15  ;;  %v2804_v11 = vpack.c.bf16 %v838_v10, %v837_v9  ;;  %v1069_v42 = vld [vmem:[#allocation8 + $0x118] sm:$0xff]  ;;  %v1079_v63 = vld [vmem:[#allocation8 + $0x168] sm:$0xff]  ;;  %s3315_s13 = scalar_lea.vmem %s3969_s27, 128  ;;  %p3322_p9 = scmp.lt.s32.totalorder %s3969_s27, %s3320_s3 }
 0x100   : > { %v1073_v48 = vld [vmem:[#allocation8 + $0x138] sm:$0xff]  ;;  %p3316_p2 = scmp.ne.s32.totalorder %s3969_s27, %s3315_s13  ;;  %p3323_p4 = scmp.lt.s32.totalorder %s3321_s29, %s3315_s13 }
 0x101   : > { %v1077_v58 = vld [vmem:[#allocation8 + $0x158] sm:$0xff] }
 0x102   : > { %2747 = vmatpush3.bf16.msra.mxu0 %v2744_v15  ;;  %p3317_p10 = pnand %p3316_p2, %p4090_p5  ;;  %p3324_p11 = por %p3323_p4, %p3322_p9 }
 0x103   : > { %2749 = vmatprep.subr.bf16.mxu0 %v2748_v18 }
 0x104   : > { %p3318_p8 = pneg %p3317_p10 }
 0x106   : > { %2751 = vmatpush3.bf16.msra.mxu0 %v2748_v18  ;;  %p3325_p13 = pnand %p3324_p11, %p3318_p8 }
 0x107   : > { %2753 = vmatprep.subr.bf16.mxu0 %v2752_v21 }
 0x10a   : > { %2755 = vmatpush3.bf16.msra.mxu0 %v2752_v21 }
 0x10b   : > { %2757 = vmatprep.subr.bf16.mxu0 %v2756_v24 }
 0x10e   : > { %2759 = vmatpush3.bf16.msra.mxu0 %v2756_v24 }
 0x111   : > { %2345 = vmatmul.mubr.f32.vlgmr.msra.gmra.mrb[0].mxu0 %v541_v25 }
 0x112   : > { %2347 = vmatprep.mubr.f32.mxu0 %v542_v26 }
 0x115   : > { %2348 = vmatmul.mubr.f32.gmra.mrb[2].mxu0 %v543_v27 }
 0x116   : > { %2350 = vmatprep.mubr.f32.mxu0 %v544_v28 }
 0x119   : > { %2351 = vmatmul.mubr.f32.gmra.mrb[4].mxu0 %v545_v29 }
 0x11a   : > { %2353 = vmatprep.mubr.f32.mxu0 %v546_v30 }
 0x11d   : > { %2354 = vmatmul.mubr.f32.gmra.mrb[6].mxu0 %v547_v31 }
 0x1e4   : > { %v2346_v33 = vpop.f32.mrb[0].mxu0 }
 0x1e5   : > { %v630_v34 = vpop.f32.mrb[1].mxu0 }
 0x1e6   : > { %v2760_v35 = vpack.c.bf16 %v2346_v33, %v630_v34 }
 0x1e8   : > { %v2349_v36 = vpop.f32.mrb[2].mxu0  ;;  %2761 = vmatprep.subr.bf16.mxu1 %v2760_v35 }
 0x1e9   : > { %v640_v37 = vpop.f32.mrb[3].mxu0  ;;  %2763 = vmatpush3.bf16.msra.mxu1 %v2760_v35 }
 0x1ea   : > { %v2764_v38 = vpack.c.bf16 %v2349_v36, %v640_v37 }
 0x1ec   : > { %v2352_v39 = vpop.f32.mrb[4].mxu0  ;;  %2765 = vmatprep.subr.bf16.mxu1 %v2764_v38 }
 0x1ed   : > { %v650_v40 = vpop.f32.mrb[5].mxu0  ;;  %2767 = vmatpush3.bf16.msra.mxu1 %v2764_v38  ;;  %v1066_v38 = vld [vmem:[#allocation8 + $0x100] sm:$0xff] }
 0x1ee   : > { %v2768_v41 = vpack.c.bf16 %v2352_v39, %v650_v40  ;;  %v1067_v39 = vld [vmem:[#allocation8 + $0x108] sm:$0xff]  ;;  %v1068_v40 = vld [vmem:[#allocation8 + $0x110] sm:$0xff] }
 0x1ef   : > { %v2828_v43 = vpack.c.bf16 %v1069_v42, %v1068_v40 }
 0x1f0   : > { %v2355_v44 = vpop.f32.mrb[6].mxu0  ;;  %2769 = vmatprep.subr.bf16.mxu1 %v2768_v41 }
 0x1f1   : > { %v660_v45 = vpop.f32.mrb[7].mxu0  ;;  %2771 = vmatpush3.bf16.msra.mxu1 %v2768_v41  ;;  %v2824_v41 = vpack.c.bf16 %v1067_v39, %v1066_v38 }
 0x1f2   : > { %v2772_v46 = vpack.c.bf16 %v2355_v44, %v660_v45  ;;  %v1070_v44 = vld [vmem:[#allocation8 + $0x120] sm:$0xff]  ;;  %v1071_v45 = vld [vmem:[#allocation8 + $0x128] sm:$0xff] }
 0x1f3   : > { %2825 = vmatprep.subr.bf16.mxu0 %v2824_v41 }
 0x1f4   : > { %2773 = vmatprep.subr.bf16.mxu1 %v2772_v46  ;;  %2827 = vmatpush3.bf16.msra.mxu0 %v2824_v41 }
 0x1f5   : > { %2775 = vmatpush3.bf16.msra.mxu1 %v2772_v46  ;;  %2829 = vmatprep.subr.bf16.mxu0 %v2828_v43  ;;  %v2832_v46 = vpack.c.bf16 %v1071_v45, %v1070_v44 }
 0x1f6   : > { %2777 = vmatprep.subr.bf16.mxu1 %v2776_v47 }
 0x1f8   : > { %2373 = vmatmul.mubr.msk.f32.vlgmr.msra.gmra.mrb[0].mxu1 %vm684_vm0, %v3812_v50  ;;  %2831 = vmatpush3.bf16.msra.mxu0 %v2828_v43 }
 0x1f9   : > { %2375 = vmatprep.mubr.msk.f32.mxu1 %vm684_vm0, %v3815_v51  ;;  %2779 = vmatpush3.bf16.msra.mxu1 %v2776_v47  ;;  %v1072_v47 = vld [vmem:[#allocation8 + $0x130] sm:$0xff] }
 0x1fa   : > { %2781 = vmatprep.subr.bf16.mxu1 %v2780_v52  ;;  %2833 = vmatprep.subr.bf16.mxu0 %v2832_v46  ;;  %v2836_v49 = vpack.c.bf16 %v1073_v48, %v1072_v47 }
 0x1fc   : > { %2376 = vmatmul.mubr.msk.f32.gmra.mrb[2].mxu1 %vm684_vm0, %v3822_v55  ;;  %2835 = vmatpush3.bf16.msra.mxu0 %v2832_v46 }
 0x1fd   : > { %2378 = vmatprep.mubr.msk.f32.mxu1 %vm684_vm0, %v3825_v56  ;;  %2783 = vmatpush3.bf16.msra.mxu1 %v2780_v52  ;;  %v1074_v52 = vld [vmem:[#allocation8 + $0x140] sm:$0xff] }
 0x1fe   : > { %2785 = vmatprep.subr.bf16.mxu1 %v2784_v57  ;;  %2837 = vmatprep.subr.bf16.mxu0 %v2836_v49  ;;  %v2840_v54 = vpack.c.bf16 %v1075_v53, %v1074_v52 }
 0x200   : > { %2379 = vmatmul.mubr.msk.f32.gmra.mrb[4].mxu1 %vm684_vm0, %v3832_v60  ;;  %2839 = vmatpush3.bf16.msra.mxu0 %v2836_v49 }
 0x201   : > { %2381 = vmatprep.mubr.msk.f32.mxu1 %vm684_vm0, %v3835_v61  ;;  %2787 = vmatpush3.bf16.msra.mxu1 %v2784_v57  ;;  %v1076_v57 = vld [vmem:[#allocation8 + $0x150] sm:$0xff] }
 0x202   : > { %2789 = vmatprep.subr.bf16.mxu1 %v2788_v62  ;;  %2841 = vmatprep.subr.bf16.mxu0 %v2840_v54  ;;  %v2844_v59 = vpack.c.bf16 %v1077_v58, %v1076_v57  ;;  %v3404_v58 = vmov 0.0|0.0  }
 0x204   : > { %2382 = vmatmul.mubr.msk.f32.gmra.mrb[6].mxu1 %vm684_vm0, %v3842_v1  ;;  %2843 = vmatpush3.bf16.msra.mxu0 %v2840_v54 }
 0x205   : > { %2791 = vmatpush3.bf16.msra.mxu1 %v2788_v62  ;;  %v1078_v62 = vld [vmem:[#allocation8 + $0x160] sm:$0xff]  ;;  %2845 = vmatprep.subr.bf16.mxu0 %v2844_v59 }
 0x206   : > { %2793 = vmatprep.subr.bf16.mxu1 %v2792_v2  ;;  %v2848_v0 = vpack.c.bf16 %v1079_v63, %v1078_v62  ;;  %v1422_v62 = vld [vmem:[#allocation10 + $0xa8] sm:$0xff] }
 0x208   : > { %2847 = vmatpush3.bf16.msra.mxu0 %v2844_v59  ;;  %v1421_v59 = vld [vmem:[#allocation10 + $0xa0] sm:$0xff] }
 0x209   : > { %2795 = vmatpush3.bf16.msra.mxu1 %v2792_v2  ;;  %2849 = vmatprep.subr.bf16.mxu0 %v2848_v0  ;;  %v2891_v63 = vpack.c.bf16 %v1422_v62, %v1421_v59  ;;  %v1410_v59 = vld [vmem:[#allocation10 + $0x50] sm:$0xff]  ;;  %v1411_v62 = vld [vmem:[#allocation10 + $0x58] sm:$0xff] }
 0x20a   : > { %2797 = vmatprep.subr.bf16.mxu1 %v2796_v5 }
 0x20c   : > { %2851 = vmatpush3.bf16.msra.mxu0 %v2848_v0  ;;  %v1423_v0 = vld [vmem:[#allocation10 + $0xb0] sm:$0xff] }
 0x20d   : > { %2799 = vmatpush3.bf16.msra.mxu1 %v2796_v5 }
 0x20e   : > { %2801 = vmatprep.subr.bf16.mxu1 %v2800_v8 }
 0x211   : > { %2803 = vmatpush3.bf16.msra.mxu1 %v2800_v8 }
 0x212   : > { %2805 = vmatprep.subr.bf16.mxu1 %v2804_v11 }
 0x215   : > { %2807 = vmatpush3.bf16.msra.mxu1 %v2804_v11 }
 0x2cb   : > { %v2374_v13 = vpop.f32.mrb[0].mxu1 }
 0x2cc   : > { %v781_v14 = vadd.f32 %v2374_v13, %v2055_v12  ;;  %v775_v15 = vpop.f32.mrb[1].mxu1 }
 0x2cd   : > { %v776_v16 = vadd.f32 %v2055_v12, %v775_v15  ;;  %v1081_v15 = vld [vmem:[#allocation8 + $0x178] sm:$0xff] }
 0x2ce   : > { %v815_v19 = vmax.f32 %v781_v14, 0.0  ;;  %v1080_v14 = vld [vmem:[#allocation8 + $0x170] sm:$0xff] }
 0x2cf   : > { %v814_v17 = vmax.f32 %v776_v16, 0.0  ;;  %v2377_v18 = vpop.f32.mrb[2].mxu1  ;;  %v2852_v16 = vpack.c.bf16 %v1081_v15, %v1080_v14 }
 0x2d0   : > { %v791_v20 = vadd.f32 %v2377_v18, %v2055_v12  ;;  %v785_v21 = vpop.f32.mrb[3].mxu1 }
 0x2d1   : > { %v786_v22 = vadd.f32 %v2055_v12, %v785_v21  ;;  %2416 = vmatprep.mubr.f32.mxu1 %v814_v17  ;;  %2853 = vmatprep.subr.bf16.mxu0 %v2852_v16  ;;  %v2065_v17 = vld [vmem:[%s4014_s4 + $0x1] ss:$0 sm:$0xff] }
 0x2d2   : > { %2417 = vmatmul.mubr.f32.vlgmr.msra.gmra.mrb[8].mxu1 %v815_v19  ;;  %v817_v25 = vmax.f32 %v791_v20, 0.0  ;;  %2855 = vmatpush3.bf16.msra.mxu0 %v2852_v16 }
 0x2d3   : > { %v816_v23 = vmax.f32 %v786_v22, 0.0  ;;  %v2380_v24 = vpop.f32.mrb[4].mxu1  ;;  %2884 = vmatprep.subr.bf16.mxu0 %v3404_v58 }
 0x2d4   : > { %v801_v26 = vadd.f32 %v2380_v24, %v2055_v12  ;;  %v795_v27 = vpop.f32.mrb[5].mxu1 }
 0x2d5   : > { %v796_v28 = vadd.f32 %v2055_v12, %v795_v27  ;;  %2419 = vmatprep.mubr.f32.mxu1 %v816_v23 }
 0x2d6   : > { %2420 = vmatmul.mubr.f32.gmra.mrb[10].mxu1 %v817_v25  ;;  %v819_v31 = vmax.f32 %v801_v26, 0.0 }
 0x2d7   : > { %v818_v29 = vmax.f32 %v796_v28, 0.0  ;;  %v2383_v30 = vpop.f32.mrb[6].mxu1 }
 0x2d8   : > { %v811_v33 = vadd.f32 %v2383_v30, %v2055_v12  ;;  %v805_v34 = vpop.f32.mrb[7].mxu1 }
 0x2d9   : > { %v806_v35 = vadd.f32 %v2055_v12, %v805_v34  ;;  %2422 = vmatprep.mubr.f32.mxu1 %v818_v29 }
 0x2da   : > { %2423 = vmatmul.mubr.f32.gmra.mrb[12].mxu1 %v819_v31  ;;  %v821_v37 = vmax.f32 %v811_v33, 0.0 }
 0x2db   : > { %v820_v36 = vmax.f32 %v806_v35, 0.0 }
 0x2dd   : > { %2425 = vmatprep.mubr.f32.mxu1 %v820_v36 }
 0x2de   : > { %2426 = vmatmul.mubr.f32.gmra.mrb[14].mxu1 %v821_v37 }
 0x2df   : > { %2444 = vmatprep.mubr.msk.f32.mxu1 %vm684_vm0, %v3807_v32 }
 0x3a5   : > { %v2418_v2 = vpop.f32.mrb[8].mxu1 }
 0x3a6   : > { %v905_v3 = vpop.f32.mrb[9].mxu1 }
 0x3a7   : > { %v2808_v4 = vpack.c.bf16 %v2418_v2, %v905_v3  ;;  %v1424_v2 = vld [vmem:[#allocation10 + $0xb8] sm:$0xff] }
 0x3a8   : > { %v2894_v3 = vpack.c.bf16 %v1424_v2, %v1423_v0  ;;  %v1412_v0 = vld [vmem:[#allocation10 + $0x60] sm:$0xff]  ;;  %v1413_v2 = vld [vmem:[#allocation10 + $0x68] sm:$0xff] }
 0x3a9   : > { %v2421_v5 = vpop.f32.mrb[10].mxu1  ;;  %2809 = vmatprep.subr.bf16.mxu1 %v2808_v4 }
 0x3aa   : > { %v915_v6 = vpop.f32.mrb[11].mxu1  ;;  %2811 = vmatpush3.bf16.msra.mxu1 %v2808_v4  ;;  %v1425_v4 = vld [vmem:[#allocation10 + $0xc0] sm:$0xff] }
 0x3ab   : > { %v2812_v7 = vpack.c.bf16 %v2421_v5, %v915_v6  ;;  %v1426_v5 = vld [vmem:[#allocation10 + $0xc8] sm:$0xff] }
 0x3ac   : > { %v2897_v6 = vpack.c.bf16 %v1426_v5, %v1425_v4  ;;  %v1414_v4 = vld [vmem:[#allocation10 + $0x70] sm:$0xff]  ;;  %v1415_v5 = vld [vmem:[#allocation10 + $0x78] sm:$0xff] }
 0x3ad   : > { %v2424_v8 = vpop.f32.mrb[12].mxu1  ;;  %2813 = vmatprep.subr.bf16.mxu1 %v2812_v7 }
 0x3ae   : > { %v925_v9 = vpop.f32.mrb[13].mxu1  ;;  %2815 = vmatpush3.bf16.msra.mxu1 %v2812_v7  ;;  %v1427_v7 = vld [vmem:[#allocation10 + $0xd0] sm:$0xff] }
 0x3af   : > { %v2816_v10 = vpack.c.bf16 %v2424_v8, %v925_v9  ;;  %v1428_v8 = vld [vmem:[#allocation10 + $0xd8] sm:$0xff] }
 0x3b0   : > { %v2900_v9 = vpack.c.bf16 %v1428_v8, %v1427_v7  ;;  %v1431_v7 = vld [vmem:[#allocation10 + $0xf0] sm:$0xff]  ;;  %v1432_v8 = vld [vmem:[#allocation10 + $0xf8] sm:$0xff] }
 0x3b1   : > { %v2427_v11 = vpop.f32.mrb[14].mxu1  ;;  %2817 = vmatprep.subr.bf16.mxu1 %v2816_v10 }
 0x3b2   : > { %v935_v12 = vpop.f32.mrb[15].mxu1  ;;  %2819 = vmatpush3.bf16.msra.mxu1 %v2816_v10  ;;  %v1429_v10 = vld [vmem:[#allocation10 + $0xe0] sm:$0xff] }
 0x3b3   : > { %v2820_v13 = vpack.c.bf16 %v2427_v11, %v935_v12  ;;  %v1430_v11 = vld [vmem:[#allocation10 + $0xe8] sm:$0xff] }
 0x3b4   : > { %v2903_v12 = vpack.c.bf16 %v1430_v11, %v1429_v10  ;;  %v1574_v10 = vld [vmem:[#allocation10 + $0x100] sm:$0xff]  ;;  %v1575_v11 = vld [vmem:[#allocation10 + $0x108] sm:$0xff] }
 0x3b5   : > { %2821 = vmatprep.subr.bf16.mxu1 %v2820_v13 }
 0x3b6   : > { %2823 = vmatpush3.bf16.msra.mxu1 %v2820_v13  ;;  %v2075_v13 = vld [vmem:[%s4014_s4 + $0x2] ss:$0 sm:$0xff] }
 0x3b9   : > { %2445 = vmatmul.mubr.msk.f32.vlgmr.msra.gmra.mrb[16].mxu1 %vm684_vm0, %v3812_v50 }
 0x3ba   : > { %2447 = vmatprep.mubr.msk.f32.mxu1 %vm684_vm0, %v3815_v51 }
 0x3bd   : > { %2448 = vmatmul.mubr.msk.f32.gmra.mrb[18].mxu1 %vm684_vm0, %v3822_v55 }
 0x3be   : > { %2450 = vmatprep.mubr.msk.f32.mxu1 %vm684_vm0, %v3825_v56 }
 0x3c1   : > { %2451 = vmatmul.mubr.msk.f32.gmra.mrb[20].mxu1 %vm684_vm0, %v3832_v60 }
 0x3c2   : > { %2453 = vmatprep.mubr.msk.f32.mxu1 %vm684_vm0, %v3835_v61 }
 0x3c5   : > { %2454 = vmatmul.mubr.msk.f32.gmra.mrb[22].mxu1 %vm684_vm0, %v3842_v1 }
 0x3c6   : > { %2516 = vmatprep.mubr.msk.f32.mxu1 %vm684_vm0, %v3807_v32 }
 0x48c   : > { %v2446_v18 = vpop.f32.mrb[16].mxu1 }
 0x48d   : > { %v1024_v19 = vadd.f32 %v2446_v18, %v2065_v17  ;;  %v1018_v20 = vpop.f32.mrb[17].mxu1 }
 0x48e   : > { %v1019_v21 = vadd.f32 %v2065_v17, %v1018_v20 }
 0x48f   : > { %v1058_v24 = vmax.f32 %v1024_v19, 0.0 }
 0x490   : > { %v1057_v22 = vmax.f32 %v1019_v21, 0.0  ;;  %v2449_v23 = vpop.f32.mrb[18].mxu1 }
 0x491   : > { %v1034_v25 = vadd.f32 %v2449_v23, %v2065_v17  ;;  %v1028_v26 = vpop.f32.mrb[19].mxu1 }
 0x492   : > { %v1029_v27 = vadd.f32 %v2065_v17, %v1028_v26  ;;  %2488 = vmatprep.mubr.f32.mxu0 %v1057_v22 }
 0x493   : > { %2489 = vmatmul.mubr.f32.vlgmr.msra.gmra.mrb[8].mxu0 %v1058_v24  ;;  %v1060_v29 = vmax.f32 %v1034_v25, 0.0 }
 0x494   : > { %v1059_v32 = vmax.f32 %v1029_v27, 0.0  ;;  %v2452_v28 = vpop.f32.mrb[20].mxu1 }
 0x495   : > { %v1044_v30 = vadd.f32 %v2452_v28, %v2065_v17  ;;  %v1038_v31 = vpop.f32.mrb[21].mxu1 }
 0x496   : > { %v1039_v33 = vadd.f32 %v2065_v17, %v1038_v31  ;;  %2491 = vmatprep.mubr.f32.mxu0 %v1059_v32 }
 0x497   : > { %2492 = vmatmul.mubr.f32.gmra.mrb[10].mxu0 %v1060_v29  ;;  %v1062_v36 = vmax.f32 %v1044_v30, 0.0 }
 0x498   : > { %v1061_v34 = vmax.f32 %v1039_v33, 0.0  ;;  %v2455_v35 = vpop.f32.mrb[22].mxu1 }
 0x499   : > { %v1054_v37 = vadd.f32 %v2455_v35, %v2065_v17  ;;  %v1048_v38 = vpop.f32.mrb[23].mxu1 }
 0x49a   : > { %v1049_v39 = vadd.f32 %v2065_v17, %v1048_v38  ;;  %2494 = vmatprep.mubr.f32.mxu0 %v1061_v34 }
 0x49b   : > { %2495 = vmatmul.mubr.f32.gmra.mrb[12].mxu0 %v1062_v36  ;;  %v1064_v41 = vmax.f32 %v1054_v37, 0.0 }
 0x49c   : > { %v1063_v40 = vmax.f32 %v1049_v39, 0.0 }
 0x49e   : > { %2497 = vmatprep.mubr.f32.mxu0 %v1063_v40 }
 0x49f   : > { %2498 = vmatmul.mubr.f32.gmra.mrb[14].mxu0 %v1064_v41  ;;  %v1400_v41 = vld [vmem:[#allocation10] sm:$0xff] }
 0x566   : > { %v2490_v42 = vpop.f32.mrb[8].mxu0 }
 0x567   : > { %v1148_v43 = vpop.f32.mrb[9].mxu0 }
 0x568   : > { %v2856_v44 = vpack.c.bf16 %v2490_v42, %v1148_v43  ;;  %v1401_v42 = vld [vmem:[#allocation10 + $0x8] sm:$0xff] }
 0x56a   : > { %v2493_v45 = vpop.f32.mrb[10].mxu0  ;;  %2857 = vmatprep.subr.bf16.mxu1 %v2856_v44 }
 0x56b   : > { %v1158_v46 = vpop.f32.mrb[11].mxu0  ;;  %2859 = vmatpush3.bf16.msra.mxu1 %v2856_v44  ;;  %v1308_v44 = vld [vmem:[%s3788_s30] sm:$0xff] }
 0x56c   : > { %v2860_v47 = vpack.c.bf16 %v2493_v45, %v1158_v46  ;;  %v2909_v45 = vpack.c.bf16 %v1401_v42, %v1400_v41  ;;  %v1402_v46 = vld [vmem:[#allocation10 + $0x10] sm:$0xff]  ;;  %v1671_v41 = vld [vmem:[#allocation11 + $0x8] sm:$0xff] }
 0x56d   : > { %v1672_v42 = vld [vmem:[#allocation11 + $0x10] sm:$0xff] }
 0x56e   : > { %v2496_v48 = vpop.f32.mrb[12].mxu0  ;;  %2861 = vmatprep.subr.bf16.mxu1 %v2860_v47 }
 0x56f   : > { %v1168_v49 = vpop.f32.mrb[13].mxu0  ;;  %2863 = vmatpush3.bf16.msra.mxu1 %v2860_v47  ;;  %v1403_v47 = vld [vmem:[#allocation10 + $0x18] sm:$0xff] }
 0x570   : > { %v2864_v52 = vpack.c.bf16 %v2496_v48, %v1168_v49  ;;  %v1309_v48 = vld [vmem:[%s3788_s30 + $0x8] sm:$0xff]  ;;  %v2912_v49 = vpack.c.bf16 %v1403_v47, %v1402_v46  ;;  %v1674_v46 = vld [vmem:[#allocation11 + $0x20] sm:$0xff]  ;;  %v1675_v47 = vld [vmem:[#allocation11 + $0x28] sm:$0xff] }
 0x572   : > { %v2499_v53 = vpop.f32.mrb[14].mxu0  ;;  %2865 = vmatprep.subr.bf16.mxu1 %v2864_v52 }
 0x573   : > { %v1178_v54 = vpop.f32.mrb[15].mxu0  ;;  %2867 = vmatpush3.bf16.msra.mxu1 %v2864_v52  ;;  %v1404_v52 = vld [vmem:[#allocation10 + $0x20] sm:$0xff] }
 0x574   : > { %v2868_v57 = vpack.c.bf16 %v2499_v53, %v1178_v54  ;;  %v1405_v53 = vld [vmem:[#allocation10 + $0x28] sm:$0xff]  ;;  %v1310_v54 = vld [vmem:[%s3788_s30 + $0x10] sm:$0xff] }
 0x576   : > { %2869 = vmatprep.subr.bf16.mxu1 %v2868_v57 }
 0x577   : > { %2871 = vmatpush3.bf16.msra.mxu1 %v2868_v57  ;;  %v2915_v57 = vpack.c.bf16 %v1405_v53, %v1404_v52  ;;  %v1677_v52 = vld [vmem:[#allocation11 + $0x38] sm:$0xff] }
 0x578   : > { %2872 = vmatprep.subr.bf16.mxu1 %v3404_v58 }
 0x57a   : > { %2517 = vmatmul.mubr.msk.f32.vlgmr.msra.gmra.mrb[24].mxu1 %vm684_vm0, %v3812_v50  ;;  %v3406_v50 = vmov 0.0  }
 0x57b   : > { %2519 = vmatprep.mubr.msk.f32.mxu1 %vm684_vm0, %v3815_v51  ;;  %2585 = vmatprep.mubr.msk.f32.mxu0 %vm3405_vm1, %v3406_v50  ;;  %v1417_v51 = vld [vmem:[#allocation10 + $0x80] sm:$0xff] }
 0x57e   : > { %2520 = vmatmul.mubr.msk.f32.gmra.mrb[26].mxu1 %vm684_vm0, %v3822_v55  ;;  %v1418_v55 = vld [vmem:[#allocation10 + $0x88] sm:$0xff] }
 0x57f   : > { %2522 = vmatprep.mubr.msk.f32.mxu1 %vm684_vm0, %v3825_v56  ;;  %v2885_v56 = vpack.c.bf16 %v1418_v55, %v1417_v51  ;;  %v1406_v51 = vld [vmem:[#allocation10 + $0x30] sm:$0xff]  ;;  %v1407_v55 = vld [vmem:[#allocation10 + $0x38] sm:$0xff] }
 0x581   : > { %2886 = vmatpush3.bf16.msra.mxu0 %v2885_v56  ;;  %v2918_v56 = vpack.c.bf16 %v1407_v55, %v1406_v51  ;;  %v1680_v51 = vld [vmem:[#allocation11 + $0x50] sm:$0xff]  ;;  %v1681_v55 = vld [vmem:[#allocation11 + $0x58] sm:$0xff] }
 0x582   : > { %2523 = vmatmul.mubr.msk.f32.gmra.mrb[28].mxu1 %vm684_vm0, %v3832_v60  ;;  %v1419_v60 = vld [vmem:[#allocation10 + $0x90] sm:$0xff]  ;;  %2887 = vmatprep.subr.bf16.mxu0 %v3404_v58 }
 0x583   : > { %2525 = vmatprep.mubr.msk.f32.mxu1 %vm684_vm0, %v3835_v61  ;;  %v1420_v61 = vld [vmem:[#allocation10 + $0x98] sm:$0xff] }
 0x586   : > { %2526 = vmatmul.mubr.msk.f32.gmra.mrb[30].mxu1 %vm684_vm0, %v3842_v1  ;;  %v2888_v1 = vpack.c.bf16 %v1420_v61, %v1419_v60  ;;  %v1408_v60 = vld [vmem:[#allocation10 + $0x40] sm:$0xff]  ;;  %v1409_v61 = vld [vmem:[#allocation10 + $0x48] sm:$0xff] }
 0x587   : > { %2544 = vmatprep.mubr.msk.f32.mxu1 %vm3405_vm1, %v3406_v50 }
 0x588   : > { %2889 = vmatpush3.bf16.msra.mxu0 %v2888_v1  ;;  %v2921_v1 = vpack.c.bf16 %v1409_v61, %v1408_v60  ;;  %v1682_v60 = vld [vmem:[#allocation11 + $0x60] sm:$0xff]  ;;  %v1683_v61 = vld [vmem:[#allocation11 + $0x68] sm:$0xff] }
 0x589   : > { %2890 = vmatprep.subr.bf16.mxu0 %v3404_v58 }
 0x58c   : > { %2892 = vmatpush3.bf16.msra.mxu0 %v2891_v63  ;;  %v2924_v63 = vpack.c.bf16 %v1411_v62, %v1410_v59  ;;  %v1684_v59 = vld [vmem:[#allocation11 + $0x70] sm:$0xff]  ;;  %v1685_v62 = vld [vmem:[#allocation11 + $0x78] sm:$0xff] }
 0x58d   : > { %2893 = vmatprep.subr.bf16.mxu0 %v3404_v58 }
 0x590   : > { %2895 = vmatpush3.bf16.msra.mxu0 %v2894_v3  ;;  %v2927_v3 = vpack.c.bf16 %v1413_v2, %v1412_v0  ;;  %v1764_v0 = vld [vmem:[#allocation13] sm:$0xff]  ;;  %v1765_v2 = vld [vmem:[#allocation13 + $0x8] sm:$0xff] }
 0x591   : > { %2896 = vmatprep.subr.bf16.mxu0 %v3404_v58 }
 0x594   : > { %2898 = vmatpush3.bf16.msra.mxu0 %v2897_v6  ;;  %v2930_v6 = vpack.c.bf16 %v1415_v5, %v1414_v4  ;;  %v2981_v4 = vpack.c.bf16 %v1765_v2, %v1764_v0  ;;  %v1767_v5 = vld [vmem:[#allocation13 + $0x18] sm:$0xff] }
 0x595   : > { %2899 = vmatprep.subr.bf16.mxu0 %v3404_v58 }
 0x598   : > { %2901 = vmatpush3.bf16.msra.mxu0 %v2900_v9  ;;  %v2906_v9 = vpack.c.bf16 %v1432_v8, %v1431_v7  ;;  %v1768_v7 = vld [vmem:[#allocation13 + $0x20] sm:$0xff]  ;;  %v1769_v8 = vld [vmem:[#allocation13 + $0x28] sm:$0xff] }
 0x599   : > { %2902 = vmatprep.subr.bf16.mxu0 %v3404_v58 }
 0x59c   : > { %2904 = vmatpush3.bf16.msra.mxu0 %v2903_v12 }
 0x59d   : > { %2905 = vmatprep.subr.bf16.mxu0 %v3404_v58 }
 0x5a0   : > { %2907 = vmatpush3.bf16.msra.mxu0 %v2906_v9  ;;  %v2987_v9 = vpack.c.bf16 %v1769_v8, %v1768_v7 }
 0x5a1   : > { %2932 = vmatprep.subr.bf16.mxu0 %v3404_v58 }
 0x64d   : > { %v2518_v14 = vpop.f32.mrb[24].mxu1 }
 0x64e   : > { %v1267_v15 = vadd.f32 %v2518_v14, %v2075_v13  ;;  %v1261_v16 = vpop.f32.mrb[25].mxu1  ;;  %v2933_v14 = vpack.c.bf16 %v1575_v11, %v1574_v10  ;;  %v1770_v10 = vld [vmem:[#allocation13 + $0x30] sm:$0xff]  ;;  %v1771_v11 = vld [vmem:[#allocation13 + $0x38] sm:$0xff] }
 0x64f   : > { %v1262_v17 = vadd.f32 %v2075_v13, %v1261_v16  ;;  %v1577_v16 = vld [vmem:[#allocation10 + $0x118] sm:$0xff] }
 0x650   : > { %v1301_v18 = vmax.f32 %v1267_v15, 0.0  ;;  %v1576_v15 = vld [vmem:[#allocation10 + $0x110] sm:$0xff] }
 0x651   : > { %v1300_v19 = vmax.f32 %v1262_v17, 0.0  ;;  %v2521_v20 = vpop.f32.mrb[26].mxu1 }
 0x652   : > { %v1277_v21 = vadd.f32 %v2521_v20, %v2075_v13  ;;  %v1271_v22 = vpop.f32.mrb[27].mxu1  ;;  %v1578_v20 = vld [vmem:[#allocation10 + $0x120] sm:$0xff] }
 0x653   : > { %v2873_v23 = vpack.c.bf16 %v1301_v18, %v1300_v19  ;;  %v1272_v24 = vadd.f32 %v2075_v13, %v1271_v22  ;;  %v2936_v19 = vpack.c.bf16 %v1577_v16, %v1576_v15  ;;  %v1774_v16 = vld [vmem:[#allocation13 + $0x50] sm:$0xff] }
 0x654   : > { %v1303_v25 = vmax.f32 %v1277_v21, 0.0  ;;  %v1579_v21 = vld [vmem:[#allocation10 + $0x128] sm:$0xff] }
 0x655   : > { %v1302_v26 = vmax.f32 %v1272_v24, 0.0  ;;  %v2524_v27 = vpop.f32.mrb[28].mxu1  ;;  %2874 = vmatpush3.bf16.msra.mxu1 %v2873_v23  ;;  %v2939_v24 = vpack.c.bf16 %v1579_v21, %v1578_v20  ;;  %v1777_v20 = vld [vmem:[#allocation13 + $0x68] sm:$0xff] }
 0x656   : > { %v1287_v32 = vadd.f32 %v2524_v27, %v2075_v13  ;;  %v1281_v28 = vpop.f32.mrb[29].mxu1  ;;  %2875 = vmatprep.subr.bf16.mxu1 %v3404_v58 }
 0x657   : > { %v2876_v29 = vpack.c.bf16 %v1303_v25, %v1302_v26  ;;  %v1282_v30 = vadd.f32 %v2075_v13, %v1281_v28  ;;  %v1580_v25 = vld [vmem:[#allocation10 + $0x130] sm:$0xff]  ;;  %v1581_v26 = vld [vmem:[#allocation10 + $0x138] sm:$0xff]  ;;  %v1583_v28 = vld [vmem:[#allocation10 + $0x148] sm:$0xff] }
 0x658   : > { %v1305_v31 = vmax.f32 %v1287_v32, 0.0  ;;  %v2942_v27 = vpack.c.bf16 %v1581_v26, %v1580_v25  ;;  %v1582_v32 = vld [vmem:[#allocation10 + $0x140] sm:$0xff] }
 0x659   : > { %v1304_v33 = vmax.f32 %v1282_v30, 0.0  ;;  %v2527_v34 = vpop.f32.mrb[30].mxu1  ;;  %2877 = vmatpush3.bf16.msra.mxu1 %v2876_v29  ;;  %v2945_v29 = vpack.c.bf16 %v1583_v28, %v1582_v32  ;;  %v1584_v30 = vld [vmem:[#allocation10 + $0x150] sm:$0xff] }
 0x65a   : > { %v1297_v35 = vadd.f32 %v2527_v34, %v2075_v13  ;;  %v1291_v36 = vpop.f32.mrb[31].mxu1  ;;  %2878 = vmatprep.subr.bf16.mxu1 %v3404_v58  ;;  %v1586_v34 = vld [vmem:[#allocation10 + $0x160] sm:$0xff]  ;;  %v2087_v32 = vld [vmem:[%s4016_s6] ss:$0 sm:$0xff] }
 0x65b   : > { %v2879_v37 = vpack.c.bf16 %v1305_v31, %v1304_v33  ;;  %v1292_v38 = vadd.f32 %v2075_v13, %v1291_v36  ;;  %v1585_v31 = vld [vmem:[#allocation10 + $0x158] sm:$0xff] }
 0x65c   : > { %v1307_v39 = vmax.f32 %v1297_v35, 0.0  ;;  %v2948_v33 = vpack.c.bf16 %v1585_v31, %v1584_v30  ;;  %v1587_v35 = vld [vmem:[#allocation10 + $0x168] sm:$0xff] }
 0x65d   : > { %v1306_v40 = vmax.f32 %v1292_v38, 0.0  ;;  %2880 = vmatpush3.bf16.msra.mxu1 %v2879_v37  ;;  %v2951_v36 = vpack.c.bf16 %v1587_v35, %v1586_v34  ;;  %v1588_v37 = vld [vmem:[#allocation10 + $0x170] sm:$0xff]  ;;  %v1589_v38 = vld [vmem:[#allocation10 + $0x178] sm:$0xff] }
 0x65e   : > { %2881 = vmatprep.subr.bf16.mxu1 %v3404_v58  ;;  %v1779_v34 = vld [vmem:[#allocation13 + $0x78] sm:$0xff] }
 0x65f   : > { %v2882_v43 = vpack.c.bf16 %v1307_v39, %v1306_v40  ;;  %v2954_v39 = vpack.c.bf16 %v1589_v38, %v1588_v37  ;;  %v1670_v40 = vld [vmem:[#allocation11] sm:$0xff] }
 0x661   : > { %2883 = vmatpush3.bf16.msra.mxu1 %v2882_v43  ;;  %v2957_v43 = vpack.c.bf16 %v1671_v41, %v1670_v40  ;;  %v2089_v40 = vld [vmem:[%s4087_s17] ss:$0 sm:$0xff] }
 0x662   : > { %2908 = vmatprep.subr.bf16.mxu1 %v3404_v58 }
 0x664   : > { %2545 = vmatmul.mubr.msk.f32.vlgmr.msra.gmra.mrb[32].mxu1 %vm684_vm0, %v1308_v44  ;;  %v1673_v44 = vld [vmem:[#allocation11 + $0x18] sm:$0xff] }
 0x665   : > { %2547 = vmatprep.mubr.msk.f32.mxu1 %vm3405_vm1, %v3406_v50  ;;  %2910 = vmatpush3.bf16.msra.mxu1 %v2909_v45  ;;  %v2960_v45 = vpack.c.bf16 %v1673_v44, %v1672_v42 }
 0x666   : > { %2911 = vmatprep.subr.bf16.mxu1 %v3404_v58 }
 0x668   : > { %2548 = vmatmul.mubr.msk.f32.gmra.mrb[34].mxu1 %vm684_vm0, %v1309_v48  ;;  %v2963_v48 = vpack.c.bf16 %v1675_v47, %v1674_v46 }
 0x669   : > { %2550 = vmatprep.mubr.msk.f32.mxu1 %vm3405_vm1, %v3406_v50  ;;  %2913 = vmatpush3.bf16.msra.mxu1 %v2912_v49  ;;  %v1676_v49 = vld [vmem:[#allocation11 + $0x30] sm:$0xff] }
 0x66a   : > { %2914 = vmatprep.subr.bf16.mxu1 %v3404_v58  ;;  %v2966_v53 = vpack.c.bf16 %v1677_v52, %v1676_v49 }
 0x66c   : > { %2551 = vmatmul.mubr.msk.f32.gmra.mrb[36].mxu1 %vm684_vm0, %v1310_v54  ;;  %v1679_v54 = vld [vmem:[#allocation11 + $0x48] sm:$0xff] }
 0x66d   : > { %2916 = vmatpush3.bf16.msra.mxu1 %v2915_v57  ;;  %2620 = vmatprep.mubr.msk.f32.mxu1 %vm3405_vm1, %v3406_v50 }
 0x66e   : > { %2917 = vmatprep.subr.bf16.mxu1 %v3404_v58 }
 0x671   : > { %2919 = vmatpush3.bf16.msra.mxu1 %v2918_v56  ;;  %v2972_v56 = vpack.c.bf16 %v1681_v55, %v1680_v51 }
 0x672   : > { %2920 = vmatprep.subr.bf16.mxu1 %v3404_v58 }
 0x675   : > { %2922 = vmatpush3.bf16.msra.mxu1 %v2921_v1  ;;  %v2975_v1 = vpack.c.bf16 %v1683_v61, %v1682_v60 }
 0x676   : > { %2923 = vmatprep.subr.bf16.mxu1 %v3404_v58 }
 0x679   : > { %2925 = vmatpush3.bf16.msra.mxu1 %v2924_v63  ;;  %v2978_v63 = vpack.c.bf16 %v1685_v62, %v1684_v59 }
 0x67a   : > { %2926 = vmatprep.subr.bf16.mxu1 %v3404_v58 }
 0x67d   : > { %2928 = vmatpush3.bf16.msra.mxu1 %v2927_v3  ;;  %v1766_v3 = vld [vmem:[#allocation13 + $0x10] sm:$0xff] }
 0x67e   : > { %2929 = vmatprep.subr.bf16.mxu1 %v3404_v58 }
 0x681   : > { %2931 = vmatpush3.bf16.msra.mxu1 %v2930_v6  ;;  %v2984_v6 = vpack.c.bf16 %v1767_v5, %v1766_v3 }
 0x682   : > { %2956 = vmatprep.subr.bf16.mxu1 %v3404_v58 }
 0x737   : > { %v1386_v12 = vpop.f32.mrb[32].mxu1 }
 0x738   : > { %v2546_v13 = vpop.f32.mrb[33].mxu1  ;;  %2621 = vmatmul.mubr.f32.vlgmr.msra.gmra.mrb[38].mxu1 %v1386_v12  ;;  %v2990_v12 = vpack.c.bf16 %v1771_v11, %v1770_v10 }
 0x739   : > { %2690 = vmatprep.mubr.msk.f32.mxu1 %vm3405_vm1, %v3406_v50  ;;  %2958 = vmatpush3.bf16.msra.mxu1 %v2957_v43  ;;  %v1772_v13 = vld [vmem:[#allocation13 + $0x40] sm:$0xff] }
 0x73a   : > { %2959 = vmatprep.subr.bf16.mxu1 %v3404_v58 }
 0x73b   : > { %v1391_v17 = vpop.f32.mrb[34].mxu1 }
 0x73c   : > { %v2549_v18 = vpop.f32.mrb[35].mxu1  ;;  %2586 = vmatmul.mubr.f32.vlgmr.msra.gmra.mrb[16].mxu0 %v1391_v17  ;;  %v1775_v17 = vld [vmem:[#allocation13 + $0x58] sm:$0xff] }
 0x73d   : > { %2934 = vmatpush3.bf16.msra.mxu0 %v2933_v14  ;;  %2655 = vmatprep.mubr.msk.f32.mxu0 %vm3405_vm1, %v3406_v50  ;;  %v1773_v14 = vld [vmem:[#allocation13 + $0x48] sm:$0xff]  ;;  %v2996_v18 = vpack.c.bf16 %v1775_v17, %v1774_v16 }
 0x73e   : > { %2935 = vmatprep.subr.bf16.mxu0 %v3404_v58  ;;  %2961 = vmatpush3.bf16.msra.mxu1 %v2960_v45  ;;  %v2993_v15 = vpack.c.bf16 %v1773_v14, %v1772_v13 }
 0x73f   : > { %v1396_v22 = vpop.f32.mrb[36].mxu1  ;;  %2962 = vmatprep.subr.bf16.mxu1 %v3404_v58 }
 0x740   : > { %v2552_v23 = vpop.f32.mrb[37].mxu1 }
 0x741   : > { %2937 = vmatpush3.bf16.msra.mxu0 %v2936_v19  ;;  %v1776_v19 = vld [vmem:[#allocation13 + $0x60] sm:$0xff] }
 0x742   : > { %2938 = vmatprep.subr.bf16.mxu0 %v3404_v58  ;;  %2964 = vmatpush3.bf16.msra.mxu1 %v2963_v48  ;;  %v2999_v21 = vpack.c.bf16 %v1777_v20, %v1776_v19 }
 0x743   : > { %2965 = vmatprep.subr.bf16.mxu1 %v3404_v58 }
 0x745   : > { %2940 = vmatpush3.bf16.msra.mxu0 %v2939_v24 }
 0x746   : > { %2941 = vmatprep.subr.bf16.mxu0 %v3404_v58  ;;  %2967 = vmatpush3.bf16.msra.mxu1 %v2966_v53 }
 0x747   : > { %2968 = vmatprep.subr.bf16.mxu1 %v3404_v58 }
 0x749   : > { %2943 = vmatpush3.bf16.msra.mxu0 %v2942_v27 }
 0x74a   : > { %2944 = vmatprep.subr.bf16.mxu0 %v3404_v58 }
 0x74d   : > { %2946 = vmatpush3.bf16.msra.mxu0 %v2945_v29 }
 0x74e   : > { %2947 = vmatprep.subr.bf16.mxu0 %v3404_v58 }
 0x751   : > { %2949 = vmatpush3.bf16.msra.mxu0 %v2948_v33  ;;  %v1778_v33 = vld [vmem:[#allocation13 + $0x70] sm:$0xff] }
 0x752   : > { %2950 = vmatprep.subr.bf16.mxu0 %v3404_v58  ;;  %v3002_v35 = vpack.c.bf16 %v1779_v34, %v1778_v33 }
 0x755   : > { %2952 = vmatpush3.bf16.msra.mxu0 %v2951_v36 }
 0x756   : > { %2953 = vmatprep.subr.bf16.mxu0 %v3404_v58 }
 0x759   : > { %2955 = vmatpush3.bf16.msra.mxu0 %v2954_v39 }
 0x75a   : > { %2980 = vmatprep.subr.bf16.mxu0 %v3404_v58 }
 0x75c   : > { %2656 = vmatmul.mubr.f32.vlgmr.msra.gmra.mrb[18].mxu0 %v1396_v22 }
 0x75d   : > { %2725 = vmatprep.mubr.msk.f32.mxu0 %vm3405_vm1, %v3406_v50  ;;  %v1678_v50 = vld [vmem:[#allocation11 + $0x40] sm:$0xff]  ;;  %2982 = vmatpush3.bf16.msra.mxu0 %v2981_v4 }
 0x75e   : > { %v2969_v57 = vpack.c.bf16 %v1679_v54, %v1678_v50  ;;  %2983 = vmatprep.subr.bf16.mxu0 %v3404_v58 }
 0x760   : > { %2970 = vmatpush3.bf16.msra.mxu1 %v2969_v57 }
 0x761   : > { %2971 = vmatprep.subr.bf16.mxu1 %v3404_v58  ;;  %2985 = vmatpush3.bf16.msra.mxu0 %v2984_v6 }
 0x762   : > { %2986 = vmatprep.subr.bf16.mxu0 %v3404_v58 }
 0x764   : > { %2973 = vmatpush3.bf16.msra.mxu1 %v2972_v56 }
 0x765   : > { %2974 = vmatprep.subr.bf16.mxu1 %v3404_v58  ;;  %2988 = vmatpush3.bf16.msra.mxu0 %v2987_v9 }
 0x766   : > { %2989 = vmatprep.subr.bf16.mxu0 %v3404_v58 }
 0x768   : > { %2976 = vmatpush3.bf16.msra.mxu1 %v2975_v1 }
 0x769   : > { %2977 = vmatprep.subr.bf16.mxu1 %v3404_v58  ;;  %2991 = vmatpush3.bf16.msra.mxu0 %v2990_v12 }
 0x76a   : > { %2992 = vmatprep.subr.bf16.mxu0 %v3404_v58 }
 0x76c   : > { %2979 = vmatpush3.bf16.msra.mxu1 %v2978_v63 }
 0x76d   : > { %2994 = vmatpush3.bf16.msra.mxu0 %v2993_v15 }
 0x76e   : > { %2995 = vmatprep.subr.bf16.mxu0 %v3404_v58 }
 0x771   : > { %2997 = vmatpush3.bf16.msra.mxu0 %v2996_v18 }
 0x772   : > { %2998 = vmatprep.subr.bf16.mxu0 %v3404_v58 }
 0x775   : > { %3000 = vmatpush3.bf16.msra.mxu0 %v2999_v21 }
 0x776   : > { %3001 = vmatprep.subr.bf16.mxu0 %v3404_v58  ;;  %v2088_v58 = vld [vmem:[%s4086_s14] ss:$0 sm:$0xff] }
 0x779   : > { %3003 = vmatpush3.bf16.msra.mxu0 %v3002_v35 }
 0x80b   : > { %v1569_v22 = vpop.f32.mrb[38].mxu1 }
 0x80c   : > { %v2622_v23 = vpop.f32.mrb[39].mxu1 }
 0x80f   : > { %v1499_v24 = vpop.f32.mrb[16].mxu0 }
 0x810   : > { %v1570_v25 = vadd.f32 %v1569_v22, %v1499_v24  ;;  %v2587_v26 = vpop.f32.mrb[17].mxu0 }
 0x82f   : > { %v1656_v27 = vpop.f32.mrb[18].mxu0 }
 0x830   : > { %v1660_v28 = vadd.f32 %v1656_v27, %v1570_v25  ;;  %v2657_v29 = vpop.f32.mrb[19].mxu0 }
 0x832   : > { %v1668_v30 = vadd.f32 %v2087_v32, %v1660_v28 }
 0x834   : > { %v1669_v31 = vmax.f32 %v1668_v30, 0.0 }
 0x836   : > { %2691 = vmatmul.mubr.f32.vlgmr.msra.gmra.mrb[40].mxu1 %v1669_v31 }
 0x909   : > { %v1759_v36 = vpop.f32.mrb[40].mxu1 }
 0x90a   : > { %v1760_v37 = vadd.f32 %v2088_v58, %v1759_v36  ;;  %v2692_v38 = vpop.f32.mrb[41].mxu1 }
 0x90c   : > { %v1763_v39 = vmax.f32 %v1760_v37, 0.0 }
 0x90e   : > { %2726 = vmatmul.mubr.f32.vlgmr.msra.gmra.mrb[20].mxu0 %v1763_v39 }
 0x9e1   : > { %v1853_v41 = vpop.f32.mrb[20].mxu0 }
 0x9e2   : > { %v1854_v42 = vadd.f32 %v2089_v40, %v1853_v41  ;;  %v2727_v43 = vpop.f32.mrb[21].mxu0 }
 0x9e4   : > { %1857 = vmax.xlane.f32.xlu0 %v1854_v42 }
 0xa71   : > { %v1858_v44 = vpop.xlane.xlu0 %1857 }
 0xa72   : > { %v1859_v45 = vsub.f32 %v1854_v42, %v1858_v44 }
 0xa74   : > { %v1860_v46 = vmul.f32 1.442695, %v1859_v45 }
 0xa76   : > { %3109 = vpow2.f32 %v1860_v46 }
 0xa80   : > { %v3110_v47 = vpop.eup %3109 }
 0xa81   : > { %1862 = vadd.xlane.f32.xlu0 %v3110_v47 }
 0xb0e   : > { %v1863_v48 = vpop.xlane.xlu0 %1862 }
 0xb0f   : > { %3111 = vlog2.f32 %v1863_v48 }
 0xb19   : > { %v3112_v49 = vpop.eup %3111 }
 0xb1a   : > { %v1865_v52 = vmul.f32 0.6931472, %v3112_v49 }
 0xb1c   : > { %v1866_v53 = vsub.f32 %v1859_v45, %v1865_v52 }
 0xb1e   : > { %1867 = vst [vmem:[%s539_s25] sm:$0xff] %v1866_v53 }
 0xb1f   : > { %3328 = shalt.err (!%p3325_p13)
}
 0xb20   : > { %s3329_s11 = scalar_lea.hbm %s3967_s7, 128  ;;  %s3333_s10 = scalar_lea.hbm %s4089_s23, 1024 }
 0xb21   : > { %p3330_p12 = scmp.ne.s32.totalorder %s3967_s7, %s3329_s11  ;;  %p3334_p3 = scmp.lt.u32.totalorder %s3967_s7, %s4089_s23 }
 0xb22   : > { %p3335_p7 = scmp.lt.u32.totalorder %s3333_s10, %s3329_s11  ;;  %p3337_p2 = scmp.lt.u32.totalorder %s3329_s11, %s3967_s7 }
 0xb23   : > { %p3331_p6 = pnand %p3330_p12, %p4090_p5 }
 0xb24   : > { %p3336_p1 = por %p3335_p7, %p3334_p3 }
 0xb25   : > { %p3332_p0 = pneg %p3331_p6 }
 0xb26   : > { %p3338_p10 = por %p3337_p2, %p3336_p1 }
 0xb28   : > { %p3339_p8 = pnand %p3338_p10, %p3332_p0 }
 0xb2a   : > { %3342 = shalt.err (!%p3339_p8)
}
 0xb2b   : > { %3029 = dma.vmem_to_hbm [thread:$0]  (%p4090_p5), %s3969_s27, 128, %s3967_s7, %s1869_s22  }
 0xb2c PF: > { %s4091_s28 = sld [smem:[#allocation20_spill]]  ;;  %s4092_s12 = sld [smem:[#allocation22_spill]] }
 0xb2d   : > { %p3067_p9 = scmp.ge.s32.totalorder %s3393_s20, 2 }
 0xb32   : > { %s1894_s17 = sand.u32 1, %s4091_s28   ;;  %p4093_p4 = scmp.ne.s32.totalorder %s4092_s12, 0 }
 0xb33   : > { %s1895_s1 = scalar_lea.sflag [#allocation4], %s1894_s17 }
 0xb34   : > { %p3055_p11 = pnand %p3067_p9, %p4093_p4 }
 0xb36   : > { %3376 = dma.done.wait (!%p3055_p11), %s1895_s1, 128  }
 0xb37   : > { %3378 = vsyncadd (!%p3055_p11), %s1895_s1, 4294967168  ;;  %s4094_s20 = sld [smem:[#allocation23_spill]]  ;;  %s4095_s26 = sld [smem:[#allocation21_spill]] }
 0xb38   : > { %s4096_s19 = sld [smem:[#allocation25_spill]]  ;;  %s4097_s17 = smov %s3385_s18 }
 0xb3d   : > { %p29_p13 = scmp.ge.s32.totalorder %s4094_s20, 10   ;;  %s4098_s18 = smov %s4095_s26 }
 0xb3f   :  { %31 = sbr.rel (!%p29_p13) target bundleno = 16 (0x10), region = 155 }
 0xb46   :  { %1900 = vsyncpa [#allocation3], 1 }
 0xb47   :  { %1902 = vsyncpa [#allocation3 + $0x1], 1 }
 0xb48   :  { %1903 = vsyncpa [#allocation6], 1 }
 0xb49   :  { %1905 = vsyncpa [#allocation6 + $0x1], 1 }
 0xb4a   :  { %1906 = vsyncpa [#allocation9], 1 }
 0xb4b   :  { %1907 = vsyncpa [#allocation12], 1 }
 0xb4c   :  { %1908 = vsyncpa [#allocation4], 1 }
 0xb4d   :  { %1910 = vsyncpa [#allocation4 + $0x1], 1 }

</bundles_post_ra>
